<compile_context>
chip_gen: v6e
topology: v6e:2x2x1
jax: 0.10.0
libtpu: 0.0.40
codegen_flags: <defaults>
</compile_context>

<pallas_src>
import functools
import math

import jax
import jax.numpy as jnp
import numpy as np
from jax.experimental import pallas as pl
from jax.experimental.pallas import tpu as pltpu


def _round_up(v, m):
    return (v + m - 1) // m * m


def _sigmoid_hist_kernel(x_ref, o_ref, *, scaled_centers, k1, k2, sigma, inv_n,
                         num_bins, tile_n, n_valid, mask_needed, compute_dtype):
    """x_ref: (tile_n, tile_f) examples x features;  o_ref: (num_bins, tile_f) f32 accumulator."""
    ni = pl.program_id(1)

    @pl.when(ni == 0)
    def _init():
        o_ref[...] = jnp.zeros_like(o_ref)

    # Hoisted sigma scaling on the 2-D tile (sigma*c_b folded into constants).
    xs = x_ref[...].astype(compute_dtype) * sigma            # (tile_n, tile_f)

    if mask_needed:
        # Padded example rows: push them far from every center so that
        # u = exp(-|xs - sc_b|) underflows to exactly 0 (zero contribution).
        rows = ni * tile_n + jax.lax.broadcasted_iota(jnp.int32, xs.shape, 0)
        xs = jnp.where(rows < n_valid, xs, jnp.asarray(1e30, dtype=xs.dtype))

    for b in range(num_bins):
        u = jnp.exp(-jnp.abs(xs - scaled_centers[b]))         # u <= 1
        s = (k1 * u) * pl.reciprocal(1.0 + k2 * u + u * u, approx=True)
        p = jnp.sum(s.astype(jnp.float32), axis=0, keepdims=True)  # (1, tile_f)
        o_ref[pl.ds(b, 1), :] += p

    @pl.when(ni == pl.num_programs(1) - 1)
    def _finalize():
        o_ref[...] = o_ref[...] * inv_n


def sigmoid_histogram(x, *, num_bins, vmin, vmax, sigma, n_examples_bag,
                      quantiles=False, tile_n=512, tile_f=256,
                      compute_dtype=jnp.float32):
    """JAX/Pallas equivalent of SigmoidHistogram.forward.

    x: (n_examples, n_features) float32
    returns: (n_features * num_bins,) float32, index = f * num_bins + b
    """
    x = jnp.asarray(x, jnp.float32)
    n, f = x.shape

    delta = float(vmax - vmin) / float(num_bins)
    # Single-exp rewrite constants (assumes sigma*delta/2 < ~80 so exp stays
    # finite in f32 — true for any sane histogram resolution).
    sh = float(sigma) * delta * 0.5
    k1 = math.exp(sh) - math.exp(-sh)
    k2 = math.exp(sh) + math.exp(-sh)
    scaled_centers = tuple(float(sigma) * (float(vmin) + delta * (b + 0.5))
                           for b in range(num_bins))

    # Tile sizes: features on lanes (multiple of 128), examples on sublanes.
    tile_f = min(_round_up(int(tile_f), 128), _round_up(f, 128))
    tile_n = min(_round_up(int(tile_n), 8), _round_up(n, 8))
    fp = _round_up(f, tile_f)
    np_ = _round_up(n, tile_n)
    if (np_, fp) != (n, f):
        x = jnp.pad(x, ((0, np_ - n), (0, fp - f)))

    kernel = functools.partial(
        _sigmoid_hist_kernel,
        scaled_centers=scaled_centers, k1=k1, k2=k2, sigma=float(sigma),
        inv_n=1.0 / float(n_examples_bag), num_bins=num_bins, tile_n=tile_n,
        n_valid=n, mask_needed=(np_ != n), compute_dtype=compute_dtype)

    hist = pl.pallas_call(
        kernel,
        out_shape=jax.ShapeDtypeStruct((num_bins, fp), jnp.float32),
        grid_spec=pl.GridSpec(
            grid=(fp // tile_f, np_ // tile_n),       # reduction (N) axis last
            in_specs=[pl.BlockSpec((tile_n, tile_f), lambda fi, ni: (ni, fi))],
            out_specs=pl.BlockSpec((num_bins, tile_f), lambda fi, ni: (0, fi)),
        ),
        compiler_params=pltpu.CompilerParams(
            dimension_semantics=("parallel", "arbitrary"),
            vmem_limit_bytes=48 * 1024 * 1024,        # headroom below v7x 64 MiB
        ),
    )(x)

    hist = hist[:, :f]                                # (num_bins, F), lane-dense
    if quantiles:
        hist = jnp.cumsum(hist, axis=0)               # tiny wrapper-side glue
    # Flatten to the module's f*num_bins + b ordering (cheap layout plumbing).
    return hist.T.reshape(-1)


def _reference(x, *, num_bins, vmin, vmax, sigma, n_examples_bag, quantiles=False):
    """Pure-JAX f32 reference mirroring the PyTorch forward exactly."""
    delta = float(vmax - vmin) / float(num_bins)
    centers = float(vmin) + delta * (jnp.arange(num_bins, dtype=jnp.float32) + 0.5)
    t = x.T[:, None, :] - centers[None, :, None]               # (F, num_bins, N)
    s = jax.nn.sigmoid(sigma * (t + delta / 2)) - jax.nn.sigmoid(sigma * (t - delta / 2))
    r = s.reshape(-1, x.shape[0]).sum(axis=1) / n_examples_bag
    if quantiles:
        r = r.reshape(-1, num_bins).cumsum(axis=1)
    return r.reshape(-1)


if __name__ == "__main__":
    # Module hyper-parameters (deterministic, set in-script).
    num_bins = 8
    vmin, vmax = 0.0, 1.0
    sigma = 100.0
    n_examples = 60        # not a multiple of 8  -> exercises the N mask path
    n_features = 48        # not a multiple of 128 -> exercises F padding

    key = jax.random.PRNGKey(0)
    x = jax.random.uniform(key, (n_examples, n_features), dtype=jnp.float32,
                           minval=vmin, maxval=vmax)

    for quantiles in (False, True):
        out = sigmoid_histogram(
            x, num_bins=num_bins, vmin=vmin, vmax=vmax, sigma=sigma,
            n_examples_bag=n_examples, quantiles=quantiles)
        out = jax.block_until_ready(out)

        ref = _reference(x, num_bins=num_bins, vmin=vmin, vmax=vmax, sigma=sigma,
                         n_examples_bag=n_examples, quantiles=quantiles)
        ref = jax.block_until_ready(ref)

        assert out.shape == (n_features * num_bins,)
        # Tolerance accounts for the approx EUP reciprocal (~2^-12 relative);
        # histogram values are O(1) so 5e-3 still catches any real bug.
        np.testing.assert_allclose(np.asarray(out), np.asarray(ref),
                                   rtol=5e-3, atol=5e-3)

    print("KERNEL_OK")
</pallas_src>

<mosaic_0001>
module attributes {stable_mosaic.version = 11 : i64} {
  func.func @_sigmoid_hist_kernel(%arg0: i32, %arg1: i32, %arg2: memref<64x128xf32, #tpu.memory_space<vmem>>, %arg3: memref<8x128xf32, #tpu.memory_space<vmem>>) attributes {dimension_semantics = [#tpu.dimension_semantics<parallel>, #tpu.dimension_semantics<arbitrary>], iteration_bounds = array<i64: 1, 1>, scalar_prefetch = 0 : i64, scratch_operands = 0 : i64, tpu.core_type = #tpu.core_type<tc>, window_params = [{transform_indices = @transform_0, window_bounds = array<i64: 64, 128>}, {transform_indices = @transform_1, window_bounds = array<i64: 8, 128>}]} {
    %c0_i32 = arith.constant 0 : i32
    %0 = arith.cmpi eq, %arg1, %c0_i32 : i32
    %1 = arith.extui %0 : i1 to i32
    %c0_i32_0 = arith.constant 0 : i32
    %2 = arith.cmpi ne, %1, %c0_i32_0 : i32
    scf.if %2 {
      %cst_78 = arith.constant 0.000000e+00 : f32
      %185 = vector.broadcast %cst_78 : f32 to vector<8x128xf32>
      %c0_79 = arith.constant 0 : index
      %c0_80 = arith.constant 0 : index
      %186 = vector.load %arg3[%c0_79, %c0_80] : memref<8x128xf32, #tpu.memory_space<vmem>>, vector<8x128xf32>
      tpu.vector_store %arg3[%c0_79, %c0_80], %185 {strides = array<i32>} : memref<8x128xf32, #tpu.memory_space<vmem>>, vector<8x128xf32>,
    } else {
    }
    %c0 = arith.constant 0 : index
    %c0_1 = arith.constant 0 : index
    %3 = vector.load %arg2[%c0, %c0_1] : memref<64x128xf32, #tpu.memory_space<vmem>>, vector<64x128xf32>
    %cst = arith.constant 1.000000e+02 : f32
    %4 = vector.broadcast %cst : f32 to vector<64x128xf32>
    %5 = arith.mulf %3, %4 : vector<64x128xf32>
    %c64_i32 = arith.constant 64 : i32
    %6 = arith.muli %arg1, %c64_i32 : i32
    %7 = tpu.iota {dimensions = array<i32: 0>} : vector<64x128xi32>
    %8 = vector.broadcast %6 : i32 to vector<64x128xi32>
    %9 = arith.addi %8, %7 : vector<64x128xi32>
    %c60_i32 = arith.constant 60 : i32
    %10 = vector.broadcast %c60_i32 : i32 to vector<64x128xi32>
    %11 = arith.cmpi slt, %9, %10 : vector<64x128xi32>
    %cst_2 = arith.constant 1.000000e+30 : f32
    %12 = vector.broadcast %cst_2 : f32 to vector<64x128xf32>
    %13 = arith.select %11, %5, %12 : vector<64x128xi1>, vector<64x128xf32>
    %cst_3 = arith.constant 6.250000e+00 : f32
    %14 = vector.broadcast %cst_3 : f32 to vector<64x128xf32>
    %15 = arith.subf %13, %14 : vector<64x128xf32>
    %16 = math.absf %15 : vector<64x128xf32>
    %cst_4 = arith.constant 0.000000e+00 : f32
    %17 = vector.broadcast %cst_4 : f32 to vector<64x128xf32>
    %18 = arith.subf %17, %16 : vector<64x128xf32>
    %19 = math.exp %18 : vector<64x128xf32>
    %cst_5 = arith.constant 518.010864 : f32
    %20 = vector.broadcast %cst_5 : f32 to vector<64x128xf32>
    %21 = arith.mulf %20, %19 : vector<64x128xf32>
    %cst_6 = arith.constant 518.014771 : f32
    %22 = vector.broadcast %cst_6 : f32 to vector<64x128xf32>
    %23 = arith.mulf %22, %19 : vector<64x128xf32>
    %cst_7 = arith.constant 1.000000e+00 : f32
    %24 = vector.broadcast %cst_7 : f32 to vector<64x128xf32>
    %25 = arith.addf %24, %23 : vector<64x128xf32>
    %26 = arith.mulf %19, %19 : vector<64x128xf32>
    %27 = arith.addf %25, %26 : vector<64x128xf32>
    %28 = tpu.reciprocal %27 {approx = true} : vector<64x128xf32> -> vector<64x128xf32>
    %29 = arith.mulf %21, %28 : vector<64x128xf32>
    %cst_8 = arith.constant dense<0.000000e+00> : vector<128xf32>
    %30 = vector.multi_reduction <add>, %29, %cst_8 [0] : vector<64x128xf32> to vector<128xf32>
    %31 = vector.shape_cast %30 : vector<128xf32> to vector<1x128xf32>
    %c0_9 = arith.constant 0 : index
    %c0_10 = arith.constant 0 : index
    %32 = vector.load %arg3[%c0_9, %c0_10] : memref<8x128xf32, #tpu.memory_space<vmem>>, vector<1x128xf32>
    %33 = arith.addf %32, %31 : vector<1x128xf32>
    %c0_11 = arith.constant 0 : index
    %c0_12 = arith.constant 0 : index
    %34 = vector.load %arg3[%c0_11, %c0_12] : memref<8x128xf32, #tpu.memory_space<vmem>>, vector<1x128xf32>
    tpu.vector_store %arg3[%c0_11, %c0_12], %33 {strides = array<i32>} : memref<8x128xf32, #tpu.memory_space<vmem>>, vector<1x128xf32>,
    %cst_13 = arith.constant 1.875000e+01 : f32
    %35 = vector.broadcast %cst_13 : f32 to vector<64x128xf32>
    %36 = arith.subf %13, %35 : vector<64x128xf32>
    %37 = math.absf %36 : vector<64x128xf32>
    %cst_14 = arith.constant 0.000000e+00 : f32
    %38 = vector.broadcast %cst_14 : f32 to vector<64x128xf32>
    %39 = arith.subf %38, %37 : vector<64x128xf32>
    %40 = math.exp %39 : vector<64x128xf32>
    %cst_15 = arith.constant 518.010864 : f32
    %41 = vector.broadcast %cst_15 : f32 to vector<64x128xf32>
    %42 = arith.mulf %41, %40 : vector<64x128xf32>
    %cst_16 = arith.constant 518.014771 : f32
    %43 = vector.broadcast %cst_16 : f32 to vector<64x128xf32>
    %44 = arith.mulf %43, %40 : vector<64x128xf32>
    %cst_17 = arith.constant 1.000000e+00 : f32
    %45 = vector.broadcast %cst_17 : f32 to vector<64x128xf32>
    %46 = arith.addf %45, %44 : vector<64x128xf32>
    %47 = arith.mulf %40, %40 : vector<64x128xf32>
    %48 = arith.addf %46, %47 : vector<64x128xf32>
    %49 = tpu.reciprocal %48 {approx = true} : vector<64x128xf32> -> vector<64x128xf32>
    %50 = arith.mulf %42, %49 : vector<64x128xf32>
    %cst_18 = arith.constant dense<0.000000e+00> : vector<128xf32>
    %51 = vector.multi_reduction <add>, %50, %cst_18 [0] : vector<64x128xf32> to vector<128xf32>
    %52 = vector.shape_cast %51 : vector<128xf32> to vector<1x128xf32>
    %c1 = arith.constant 1 : index
    %c0_19 = arith.constant 0 : index
    %53 = vector.load %arg3[%c1, %c0_19] : memref<8x128xf32, #tpu.memory_space<vmem>>, vector<1x128xf32>
    %54 = arith.addf %53, %52 : vector<1x128xf32>
    %c1_20 = arith.constant 1 : index
    %c0_21 = arith.constant 0 : index
    %55 = vector.load %arg3[%c1_20, %c0_21] : memref<8x128xf32, #tpu.memory_space<vmem>>, vector<1x128xf32>
    tpu.vector_store %arg3[%c1_20, %c0_21], %54 {strides = array<i32>} : memref<8x128xf32, #tpu.memory_space<vmem>>, vector<1x128xf32>,
    %cst_22 = arith.constant 3.125000e+01 : f32
    %56 = vector.broadcast %cst_22 : f32 to vector<64x128xf32>
    %57 = arith.subf %13, %56 : vector<64x128xf32>
    %58 = math.absf %57 : vector<64x128xf32>
    %cst_23 = arith.constant 0.000000e+00 : f32
    %59 = vector.broadcast %cst_23 : f32 to vector<64x128xf32>
    %60 = arith.subf %59, %58 : vector<64x128xf32>
    %61 = math.exp %60 : vector<64x128xf32>
    %cst_24 = arith.constant 518.010864 : f32
    %62 = vector.broadcast %cst_24 : f32 to vector<64x128xf32>
    %63 = arith.mulf %62, %61 : vector<64x128xf32>
    %cst_25 = arith.constant 518.014771 : f32
    %64 = vector.broadcast %cst_25 : f32 to vector<64x128xf32>
    %65 = arith.mulf %64, %61 : vector<64x128xf32>
    %cst_26 = arith.constant 1.000000e+00 : f32
    %66 = vector.broadcast %cst_26 : f32 to vector<64x128xf32>
    %67 = arith.addf %66, %65 : vector<64x128xf32>
    %68 = arith.mulf %61, %61 : vector<64x128xf32>
    %69 = arith.addf %67, %68 : vector<64x128xf32>
    %70 = tpu.reciprocal %69 {approx = true} : vector<64x128xf32> -> vector<64x128xf32>
    %71 = arith.mulf %63, %70 : vector<64x128xf32>
    %cst_27 = arith.constant dense<0.000000e+00> : vector<128xf32>
    %72 = vector.multi_reduction <add>, %71, %cst_27 [0] : vector<64x128xf32> to vector<128xf32>
    %73 = vector.shape_cast %72 : vector<128xf32> to vector<1x128xf32>
    %c2 = arith.constant 2 : index
    %c0_28 = arith.constant 0 : index
    %74 = vector.load %arg3[%c2, %c0_28] : memref<8x128xf32, #tpu.memory_space<vmem>>, vector<1x128xf32>
    %75 = arith.addf %74, %73 : vector<1x128xf32>
    %c2_29 = arith.constant 2 : index
    %c0_30 = arith.constant 0 : index
    %76 = vector.load %arg3[%c2_29, %c0_30] : memref<8x128xf32, #tpu.memory_space<vmem>>, vector<1x128xf32>
    tpu.vector_store %arg3[%c2_29, %c0_30], %75 {strides = array<i32>} : memref<8x128xf32, #tpu.memory_space<vmem>>, vector<1x128xf32>,
    %cst_31 = arith.constant 4.375000e+01 : f32
    %77 = vector.broadcast %cst_31 : f32 to vector<64x128xf32>
    %78 = arith.subf %13, %77 : vector<64x128xf32>
    %79 = math.absf %78 : vector<64x128xf32>
    %cst_32 = arith.constant 0.000000e+00 : f32
    %80 = vector.broadcast %cst_32 : f32 to vector<64x128xf32>
    %81 = arith.subf %80, %79 : vector<64x128xf32>
    %82 = math.exp %81 : vector<64x128xf32>
    %cst_33 = arith.constant 518.010864 : f32
    %83 = vector.broadcast %cst_33 : f32 to vector<64x128xf32>
    %84 = arith.mulf %83, %82 : vector<64x128xf32>
    %cst_34 = arith.constant 518.014771 : f32
    %85 = vector.broadcast %cst_34 : f32 to vector<64x128xf32>
    %86 = arith.mulf %85, %82 : vector<64x128xf32>
    %cst_35 = arith.constant 1.000000e+00 : f32
    %87 = vector.broadcast %cst_35 : f32 to vector<64x128xf32>
    %88 = arith.addf %87, %86 : vector<64x128xf32>
    %89 = arith.mulf %82, %82 : vector<64x128xf32>
    %90 = arith.addf %88, %89 : vector<64x128xf32>
    %91 = tpu.reciprocal %90 {approx = true} : vector<64x128xf32> -> vector<64x128xf32>
    %92 = arith.mulf %84, %91 : vector<64x128xf32>
    %cst_36 = arith.constant dense<0.000000e+00> : vector<128xf32>
    %93 = vector.multi_reduction <add>, %92, %cst_36 [0] : vector<64x128xf32> to vector<128xf32>
    %94 = vector.shape_cast %93 : vector<128xf32> to vector<1x128xf32>
    %c3 = arith.constant 3 : index
    %c0_37 = arith.constant 0 : index
    %95 = vector.load %arg3[%c3, %c0_37] : memref<8x128xf32, #tpu.memory_space<vmem>>, vector<1x128xf32>
    %96 = arith.addf %95, %94 : vector<1x128xf32>
    %c3_38 = arith.constant 3 : index
    %c0_39 = arith.constant 0 : index
    %97 = vector.load %arg3[%c3_38, %c0_39] : memref<8x128xf32, #tpu.memory_space<vmem>>, vector<1x128xf32>
    tpu.vector_store %arg3[%c3_38, %c0_39], %96 {strides = array<i32>} : memref<8x128xf32, #tpu.memory_space<vmem>>, vector<1x128xf32>,
    %cst_40 = arith.constant 5.625000e+01 : f32
    %98 = vector.broadcast %cst_40 : f32 to vector<64x128xf32>
    %99 = arith.subf %13, %98 : vector<64x128xf32>
    %100 = math.absf %99 : vector<64x128xf32>
    %cst_41 = arith.constant 0.000000e+00 : f32
    %101 = vector.broadcast %cst_41 : f32 to vector<64x128xf32>
    %102 = arith.subf %101, %100 : vector<64x128xf32>
    %103 = math.exp %102 : vector<64x128xf32>
    %cst_42 = arith.constant 518.010864 : f32
    %104 = vector.broadcast %cst_42 : f32 to vector<64x128xf32>
    %105 = arith.mulf %104, %103 : vector<64x128xf32>
    %cst_43 = arith.constant 518.014771 : f32
    %106 = vector.broadcast %cst_43 : f32 to vector<64x128xf32>
    %107 = arith.mulf %106, %103 : vector<64x128xf32>
    %cst_44 = arith.constant 1.000000e+00 : f32
    %108 = vector.broadcast %cst_44 : f32 to vector<64x128xf32>
    %109 = arith.addf %108, %107 : vector<64x128xf32>
    %110 = arith.mulf %103, %103 : vector<64x128xf32>
    %111 = arith.addf %109, %110 : vector<64x128xf32>
    %112 = tpu.reciprocal %111 {approx = true} : vector<64x128xf32> -> vector<64x128xf32>
    %113 = arith.mulf %105, %112 : vector<64x128xf32>
    %cst_45 = arith.constant dense<0.000000e+00> : vector<128xf32>
    %114 = vector.multi_reduction <add>, %113, %cst_45 [0] : vector<64x128xf32> to vector<128xf32>
    %115 = vector.shape_cast %114 : vector<128xf32> to vector<1x128xf32>
    %c4 = arith.constant 4 : index
    %c0_46 = arith.constant 0 : index
    %116 = vector.load %arg3[%c4, %c0_46] : memref<8x128xf32, #tpu.memory_space<vmem>>, vector<1x128xf32>
    %117 = arith.addf %116, %115 : vector<1x128xf32>
    %c4_47 = arith.constant 4 : index
    %c0_48 = arith.constant 0 : index
    %118 = vector.load %arg3[%c4_47, %c0_48] : memref<8x128xf32, #tpu.memory_space<vmem>>, vector<1x128xf32>
    tpu.vector_store %arg3[%c4_47, %c0_48], %117 {strides = array<i32>} : memref<8x128xf32, #tpu.memory_space<vmem>>, vector<1x128xf32>,
    %cst_49 = arith.constant 6.875000e+01 : f32
    %119 = vector.broadcast %cst_49 : f32 to vector<64x128xf32>
    %120 = arith.subf %13, %119 : vector<64x128xf32>
    %121 = math.absf %120 : vector<64x128xf32>
    %cst_50 = arith.constant 0.000000e+00 : f32
    %122 = vector.broadcast %cst_50 : f32 to vector<64x128xf32>
    %123 = arith.subf %122, %121 : vector<64x128xf32>
    %124 = math.exp %123 : vector<64x128xf32>
    %cst_51 = arith.constant 518.010864 : f32
    %125 = vector.broadcast %cst_51 : f32 to vector<64x128xf32>
    %126 = arith.mulf %125, %124 : vector<64x128xf32>
    %cst_52 = arith.constant 518.014771 : f32
    %127 = vector.broadcast %cst_52 : f32 to vector<64x128xf32>
    %128 = arith.mulf %127, %124 : vector<64x128xf32>
    %cst_53 = arith.constant 1.000000e+00 : f32
    %129 = vector.broadcast %cst_53 : f32 to vector<64x128xf32>
    %130 = arith.addf %129, %128 : vector<64x128xf32>
    %131 = arith.mulf %124, %124 : vector<64x128xf32>
    %132 = arith.addf %130, %131 : vector<64x128xf32>
    %133 = tpu.reciprocal %132 {approx = true} : vector<64x128xf32> -> vector<64x128xf32>
    %134 = arith.mulf %126, %133 : vector<64x128xf32>
    %cst_54 = arith.constant dense<0.000000e+00> : vector<128xf32>
    %135 = vector.multi_reduction <add>, %134, %cst_54 [0] : vector<64x128xf32> to vector<128xf32>
    %136 = vector.shape_cast %135 : vector<128xf32> to vector<1x128xf32>
    %c5 = arith.constant 5 : index
    %c0_55 = arith.constant 0 : index
    %137 = vector.load %arg3[%c5, %c0_55] : memref<8x128xf32, #tpu.memory_space<vmem>>, vector<1x128xf32>
    %138 = arith.addf %137, %136 : vector<1x128xf32>
    %c5_56 = arith.constant 5 : index
    %c0_57 = arith.constant 0 : index
    %139 = vector.load %arg3[%c5_56, %c0_57] : memref<8x128xf32, #tpu.memory_space<vmem>>, vector<1x128xf32>
    tpu.vector_store %arg3[%c5_56, %c0_57], %138 {strides = array<i32>} : memref<8x128xf32, #tpu.memory_space<vmem>>, vector<1x128xf32>,
    %cst_58 = arith.constant 8.125000e+01 : f32
    %140 = vector.broadcast %cst_58 : f32 to vector<64x128xf32>
    %141 = arith.subf %13, %140 : vector<64x128xf32>
    %142 = math.absf %141 : vector<64x128xf32>
    %cst_59 = arith.constant 0.000000e+00 : f32
    %143 = vector.broadcast %cst_59 : f32 to vector<64x128xf32>
    %144 = arith.subf %143, %142 : vector<64x128xf32>
    %145 = math.exp %144 : vector<64x128xf32>
    %cst_60 = arith.constant 518.010864 : f32
    %146 = vector.broadcast %cst_60 : f32 to vector<64x128xf32>
    %147 = arith.mulf %146, %145 : vector<64x128xf32>
    %cst_61 = arith.constant 518.014771 : f32
    %148 = vector.broadcast %cst_61 : f32 to vector<64x128xf32>
    %149 = arith.mulf %148, %145 : vector<64x128xf32>
    %cst_62 = arith.constant 1.000000e+00 : f32
    %150 = vector.broadcast %cst_62 : f32 to vector<64x128xf32>
    %151 = arith.addf %150, %149 : vector<64x128xf32>
    %152 = arith.mulf %145, %145 : vector<64x128xf32>
    %153 = arith.addf %151, %152 : vector<64x128xf32>
    %154 = tpu.reciprocal %153 {approx = true} : vector<64x128xf32> -> vector<64x128xf32>
    %155 = arith.mulf %147, %154 : vector<64x128xf32>
    %cst_63 = arith.constant dense<0.000000e+00> : vector<128xf32>
    %156 = vector.multi_reduction <add>, %155, %cst_63 [0] : vector<64x128xf32> to vector<128xf32>
    %157 = vector.shape_cast %156 : vector<128xf32> to vector<1x128xf32>
    %c6 = arith.constant 6 : index
    %c0_64 = arith.constant 0 : index
    %158 = vector.load %arg3[%c6, %c0_64] : memref<8x128xf32, #tpu.memory_space<vmem>>, vector<1x128xf32>
    %159 = arith.addf %158, %157 : vector<1x128xf32>
    %c6_65 = arith.constant 6 : index
    %c0_66 = arith.constant 0 : index
    %160 = vector.load %arg3[%c6_65, %c0_66] : memref<8x128xf32, #tpu.memory_space<vmem>>, vector<1x128xf32>
    tpu.vector_store %arg3[%c6_65, %c0_66], %159 {strides = array<i32>} : memref<8x128xf32, #tpu.memory_space<vmem>>, vector<1x128xf32>,
    %cst_67 = arith.constant 9.375000e+01 : f32
    %161 = vector.broadcast %cst_67 : f32 to vector<64x128xf32>
    %162 = arith.subf %13, %161 : vector<64x128xf32>
    %163 = math.absf %162 : vector<64x128xf32>
    %cst_68 = arith.constant 0.000000e+00 : f32
    %164 = vector.broadcast %cst_68 : f32 to vector<64x128xf32>
    %165 = arith.subf %164, %163 : vector<64x128xf32>
    %166 = math.exp %165 : vector<64x128xf32>
    %cst_69 = arith.constant 518.010864 : f32
    %167 = vector.broadcast %cst_69 : f32 to vector<64x128xf32>
    %168 = arith.mulf %167, %166 : vector<64x128xf32>
    %cst_70 = arith.constant 518.014771 : f32
    %169 = vector.broadcast %cst_70 : f32 to vector<64x128xf32>
    %170 = arith.mulf %169, %166 : vector<64x128xf32>
    %cst_71 = arith.constant 1.000000e+00 : f32
    %171 = vector.broadcast %cst_71 : f32 to vector<64x128xf32>
    %172 = arith.addf %171, %170 : vector<64x128xf32>
    %173 = arith.mulf %166, %166 : vector<64x128xf32>
    %174 = arith.addf %172, %173 : vector<64x128xf32>
    %175 = tpu.reciprocal %174 {approx = true} : vector<64x128xf32> -> vector<64x128xf32>
    %176 = arith.mulf %168, %175 : vector<64x128xf32>
    %cst_72 = arith.constant dense<0.000000e+00> : vector<128xf32>
    %177 = vector.multi_reduction <add>, %176, %cst_72 [0] : vector<64x128xf32> to vector<128xf32>
    %178 = vector.shape_cast %177 : vector<128xf32> to vector<1x128xf32>
    %c7 = arith.constant 7 : index
    %c0_73 = arith.constant 0 : index
    %179 = vector.load %arg3[%c7, %c0_73] : memref<8x128xf32, #tpu.memory_space<vmem>>, vector<1x128xf32>
    %180 = arith.addf %179, %178 : vector<1x128xf32>
    %c7_74 = arith.constant 7 : index
    %c0_75 = arith.constant 0 : index
    %181 = vector.load %arg3[%c7_74, %c0_75] : memref<8x128xf32, #tpu.memory_space<vmem>>, vector<1x128xf32>
    tpu.vector_store %arg3[%c7_74, %c0_75], %180 {strides = array<i32>} : memref<8x128xf32, #tpu.memory_space<vmem>>, vector<1x128xf32>,
    %c0_i32_76 = arith.constant 0 : i32
    %182 = arith.cmpi eq, %arg1, %c0_i32_76 : i32
    %183 = arith.extui %182 : i1 to i32
    %c0_i32_77 = arith.constant 0 : i32
    %184 = arith.cmpi ne, %183, %c0_i32_77 : i32
    scf.if %184 {
      %c0_78 = arith.constant 0 : index
      %c0_79 = arith.constant 0 : index
      %185 = vector.load %arg3[%c0_78, %c0_79] : memref<8x128xf32, #tpu.memory_space<vmem>>, vector<8x128xf32>
      %cst_80 = arith.constant 0.0166666675 : f32
      %186 = vector.broadcast %cst_80 : f32 to vector<8x128xf32>
      %187 = arith.mulf %185, %186 : vector<8x128xf32>
      %c0_81 = arith.constant 0 : index
      %c0_82 = arith.constant 0 : index
      %188 = vector.load %arg3[%c0_81, %c0_82] : memref<8x128xf32, #tpu.memory_space<vmem>>, vector<8x128xf32>
      tpu.vector_store %arg3[%c0_81, %c0_82], %187 {strides = array<i32>} : memref<8x128xf32, #tpu.memory_space<vmem>>, vector<8x128xf32>,
    } else {
    }
    return
  }
  func.func @transform_0(%arg0: i32, %arg1: i32) -> (i32, i32) {
    %c0_i32 = arith.constant 0 : i32
    return %arg1, %arg0 : i32, i32
  }
  func.func @transform_1(%arg0: i32, %arg1: i32) -> (i32, i32) {
    %c0_i32 = arith.constant 0 : i32
    %c0_i32_0 = arith.constant 0 : i32
    return %c0_i32, %arg0 : i32, i32
  }
}

</mosaic_0001>

<bundles_post_ra>
// kernel: tpu_custom_call.1
= control target key start
LH: loop header
LB: loop body
LE: loop exit
PB: predicated region body
PF: predicated region fallthrough
CT: control target
= control target key end

     0   :  { %6 = vsyncpa [#allocation3], 0  ;;  %s1817_s0 = inlined_call_operand.hbm [shape: f32[64,128], index: 0, kind: input, shape index: {}]   ;;  %s1818_s1 = inlined_call_operand.hbm [shape: f32[8,128], index: 1, kind: output, shape index: {}]  }
   0x1   :  { %7 = vsyncpa [#allocation4], 0  ;;  %s1365_s6 = smov [#allocation2]  }
   0x2   :  { %s13_s7 = sshll.u32 %s1365_s6, 4  ;;  %s14_s7 = int_to_ptr.vmem [resolvable:$true] %s13_s7 }
   0x3   :  { %s1329_s8 = scalar_lea.vmem %s14_s7, 1024  ;;  %p1334_p1 = scmp.lt.s32.totalorder %s14_s7, %s14_s7 }
   0x4   :  { %p1330_p0 = scmp.ne.s32.totalorder %s14_s7, %s1329_s8  ;;  %p1335_p2 = scmp.lt.s32.totalorder %s1329_s8, %s1329_s8 }
   0x6   :  { %p1336_p3 = por %p1335_p2, %p1334_p1 }
   0x8   :  { %p1337_p4 = pnand %p1336_p3, %p1330_p0 }
   0xa   :  { %1340 = shalt.err (!%p1337_p4)
}
   0xb   :  { %s1366_s9 = smov 128   ;;  %s1367_s10 = smov 8  }
   0xc   :  { %19 = dma.hbm_to_vmem [thread:$0]  %s1817_s0, 1024, %s14_s7, [#allocation3], %s1366_s9, %s1366_s9, %s1367_s10  }
   0xd   :  { %1361 = dma.done.wait [#allocation3], 1024  }
   0xe   :  { %1362 = vsyncadd [#allocation3], 4294966272  ;;  %v45_v0 = vlaneseq  ;;  %v1368_v1 = vmov 0.0   ;;  %v28_v4 = vld [vmem:[#allocation2] sm:$0xff]  ;;  %v29_v5 = vld [vmem:[#allocation2 + $0x8] sm:$0xff]  ;;  %s1369_s0 = smov [#allocation5]  }
   0xf   :  { %27 = vst [vmem:[#allocation5] sm:$0xff] %v1368_v1  ;;  %v30_v6 = vld [vmem:[#allocation2 + $0x10] sm:$0xff]  ;;  %v31_v7 = vld [vmem:[#allocation2 + $0x18] sm:$0xff]  ;;  %v32_v8 = vld [vmem:[#allocation2 + $0x20] sm:$0xff]  ;;  %v1383_v10 = vmul.f32 100.0, %v28_v4  ;;  %v1385_v11 = vmul.f32 100.0, %v29_v5 }
  0x10   :  { %v46_v2 = vshrl.u32 %v45_v0, 7  ;;  %v33_v9 = vld [vmem:[#allocation2 + $0x28] sm:$0xff]  ;;  %v1387_v12 = vmul.f32 100.0, %v30_v6  ;;  %v34_v13 = vld [vmem:[#allocation2 + $0x30] sm:$0xff]  ;;  %v35_v14 = vld [vmem:[#allocation2 + $0x38] sm:$0xff]  ;;  %v1389_v15 = vmul.f32 100.0, %v31_v7 }
  0x11   :  { %v1391_v16 = vmul.f32 100.0, %v32_v8  ;;  %v1393_v17 = vmul.f32 100.0, %v33_v9  ;;  %v1395_v18 = vmul.f32 100.0, %v34_v13  ;;  %v43_v19 = vmul.f32 100.0, %v35_v14  ;;  %s987_s13 = sshll.u32 %s1369_s0, 4  ;;  %s988_s13 = int_to_ptr.vmem [resolvable:$true] %s987_s13 }
  0x12   :  { %v53_v3 = vadd.s32 56, %v46_v2  ;;  %v996_v20 = vadd.f32 -6.25, %v1383_v10  ;;  %v997_v21 = vadd.f32 -6.25, %v1385_v11  ;;  %v998_v22 = vadd.f32 -6.25, %v1387_v12  ;;  %s1341_s14 = scalar_lea.vmem %s988_s13, 128  ;;  %p1346_p6 = scmp.lt.s32.totalorder %s988_s13, %s988_s13 }
  0x13   :  { %v999_v23 = vadd.f32 -6.25, %v1389_v15  ;;  %v1000_v24 = vadd.f32 -6.25, %v1391_v16  ;;  %v1001_v25 = vadd.f32 -6.25, %v1393_v17  ;;  %v1002_v27 = vadd.f32 -6.25, %v1395_v18  ;;  %p1342_p5 = scmp.ne.s32.totalorder %s988_s13, %s1341_s14  ;;  %p1347_p7 = scmp.lt.s32.totalorder %s1341_s14, %s1341_s14 }
  0x14   :  { %vm70_vm0 = vcmp.lt.s32.totalorder %v53_v3, 60  ;;  %v87_v28 = vand.u32 2147483647, %v996_v20  ;;  %v1004_v29 = vadd.f32 -18.75, %v1383_v10  ;;  %v88_v31 = vand.u32 2147483647, %v997_v21 }
  0x15   :  { %v1403_v26 = vsel %vm70_vm0, %v43_v19, 1e+30  ;;  %v89_v32 = vand.u32 2147483647, %v998_v22  ;;  %v1005_v33 = vadd.f32 -18.75, %v1385_v11  ;;  %v1006_v55 = vadd.f32 -18.75, %v1387_v12  ;;  %p1348_p8 = por %p1347_p7, %p1346_p6 }
  0x16   :  { %v1003_v30 = vadd.f32 -6.25, %v1403_v26  ;;  %v90_v34 = vand.u32 2147483647, %v999_v23  ;;  %v91_v35 = vand.u32 2147483647, %v1000_v24  ;;  %v95_v39 = vsub.f32 0.0, %v87_v28 }
  0x17   :  { %v92_v36 = vand.u32 2147483647, %v1001_v25  ;;  %v93_v37 = vand.u32 2147483647, %v1002_v27  ;;  %v96_v40 = vsub.f32 0.0, %v88_v31  ;;  %v97_v41 = vsub.f32 0.0, %v89_v32  ;;  %p1349_p9 = pnand %p1348_p8, %p1342_p5 }
  0x18   :  { %v94_v38 = vand.u32 2147483647, %v1003_v30  ;;  %v98_v42 = vsub.f32 0.0, %v90_v34  ;;  %v99_v43 = vsub.f32 0.0, %v91_v35  ;;  %v103_v47 = vmul.f32 1.442695, %v95_v39 }
  0x19   :  { %v100_v44 = vsub.f32 0.0, %v92_v36  ;;  %v101_v45 = vsub.f32 0.0, %v93_v37  ;;  %v105_v48 = vmul.f32 1.442695, %v96_v40  ;;  %v107_v49 = vmul.f32 1.442695, %v97_v41 }
  0x1a   :  { %v102_v46 = vsub.f32 0.0, %v94_v38  ;;  %v109_v50 = vmul.f32 1.442695, %v98_v42  ;;  %v111_v51 = vmul.f32 1.442695, %v99_v43  ;;  %1065 = vpow2.f32 %v103_v47 }
  0x1b   :  { %v113_v52 = vmul.f32 1.442695, %v100_v44  ;;  %v115_v53 = vmul.f32 1.442695, %v101_v45  ;;  %1067 = vpow2.f32 %v105_v48  ;;  %v1007_v56 = vadd.f32 -18.75, %v1389_v15 }
  0x1c   :  { %v117_v54 = vmul.f32 1.442695, %v102_v46  ;;  %v1008_v57 = vadd.f32 -18.75, %v1391_v16  ;;  %1069 = vpow2.f32 %v107_v49  ;;  %v1009_v58 = vadd.f32 -18.75, %v1393_v17 }
  0x1d   :  { %v1010_v59 = vadd.f32 -18.75, %v1395_v18  ;;  %v1011_v60 = vadd.f32 -18.75, %v1403_v26  ;;  %1071 = vpow2.f32 %v109_v50  ;;  %v199_v61 = vand.u32 2147483647, %v1004_v29 }
  0x1e   :  { %v200_v62 = vand.u32 2147483647, %v1005_v33  ;;  %v201_v63 = vand.u32 2147483647, %v1006_v55  ;;  %1073 = vpow2.f32 %v111_v51  ;;  %v202_v0 = vand.u32 2147483647, %v1007_v56 }
  0x1f   :  { %v203_v1 = vand.u32 2147483647, %v1008_v57  ;;  %v204_v2 = vand.u32 2147483647, %v1009_v58  ;;  %1075 = vpow2.f32 %v113_v52  ;;  %v205_v3 = vand.u32 2147483647, %v1010_v59 }
  0x20   :  { %v206_v4 = vand.u32 2147483647, %v1011_v60  ;;  %v207_v5 = vsub.f32 0.0, %v199_v61  ;;  %1077 = vpow2.f32 %v115_v53  ;;  %v208_v6 = vsub.f32 0.0, %v200_v62 }
  0x21   :  { %v209_v7 = vsub.f32 0.0, %v201_v63  ;;  %v210_v8 = vsub.f32 0.0, %v202_v0  ;;  %1079 = vpow2.f32 %v117_v54  ;;  %v211_v9 = vsub.f32 0.0, %v203_v1 }
  0x22   :  { %v212_v13 = vsub.f32 0.0, %v204_v2  ;;  %v213_v14 = vsub.f32 0.0, %v205_v3  ;;  %v214_v19 = vsub.f32 0.0, %v206_v4  ;;  %v215_v20 = vmul.f32 1.442695, %v207_v5 }
  0x23   :  { %v217_v21 = vmul.f32 1.442695, %v208_v6  ;;  %v219_v22 = vmul.f32 1.442695, %v209_v7  ;;  %v221_v23 = vmul.f32 1.442695, %v210_v8 }
  0x24   :  { %1081 = vpow2.f32 %v215_v20  ;;  %v223_v24 = vmul.f32 1.442695, %v211_v9  ;;  %v1416_v25 = vadd.f32 -31.25, %v1383_v10  ;;  %v225_v27 = vmul.f32 1.442695, %v212_v13 }
  0x25   :  { %1083 = vpow2.f32 %v217_v21  ;;  %v1418_v28 = vmul.f32 1.442695, %v213_v14  ;;  %v1421_v29 = vadd.f32 -31.25, %v1385_v11  ;;  %v1423_v30 = vmul.f32 1.442695, %v214_v19 }
  0x26   :  { %1085 = vpow2.f32 %v219_v22  ;;  %v1426_v31 = vadd.f32 -31.25, %v1387_v12  ;;  %v1429_v32 = vadd.f32 -31.25, %v1389_v15  ;;  %v1432_v34 = vadd.f32 -31.25, %v1391_v16 }
  0x27   :  { %v1066_v33 = vpop.eup %1065  ;;  %1087 = vpow2.f32 %v221_v23  ;;  %v1435_v35 = vadd.f32 -31.25, %v1393_v17  ;;  %v1438_v36 = vadd.f32 -31.25, %v1395_v18  ;;  %v1441_v39 = vadd.f32 -31.25, %v1403_v26 }
  0x28   :  { %v1068_v37 = vpop.eup %1067  ;;  %v127_v38 = vmul.f32 518.0148, %v1066_v33  ;;  %1089 = vpow2.f32 %v223_v24  ;;  %v311_v40 = vand.u32 2147483647, %v1416_v25  ;;  %v1444_v42 = vmul.f32 518.01086, %v1066_v33 }
  0x29   :  { %v1070_v41 = vpop.eup %1069  ;;  %v128_v43 = vmul.f32 518.0148, %v1068_v37  ;;  %1091 = vpow2.f32 %v225_v27  ;;  %v312_v44 = vand.u32 2147483647, %v1421_v29  ;;  %v1447_v46 = vmul.f32 518.01086, %v1068_v37 }
  0x2a   :  { %v1072_v45 = vpop.eup %1071  ;;  %v129_v47 = vmul.f32 518.0148, %v1070_v41  ;;  %v143_v48 = vmul.f32 %v1066_v33, %v1066_v33  ;;  %v144_v49 = vmul.f32 %v1068_v37, %v1068_v37  ;;  %v1449_v51 = vmul.f32 518.01086, %v1070_v41 }
  0x2b   :  { %v1074_v50 = vpop.eup %1073  ;;  %v130_v52 = vmul.f32 518.0148, %v1072_v45  ;;  %v135_v53 = vadd.f32 1.0, %v127_v38  ;;  %v145_v54 = vmul.f32 %v1070_v41, %v1070_v41  ;;  %v1451_v56 = vmul.f32 518.01086, %v1072_v45 }
  0x2c   :  { %v1076_v55 = vpop.eup %1075  ;;  %v131_v57 = vmul.f32 518.0148, %v1074_v50  ;;  %v136_v58 = vadd.f32 1.0, %v128_v43  ;;  %v137_v59 = vadd.f32 1.0, %v129_v47  ;;  %v1453_v61 = vmul.f32 518.01086, %v1074_v50 }
  0x2d   :  { %v1078_v60 = vpop.eup %1077  ;;  %v132_v62 = vmul.f32 518.0148, %v1076_v55  ;;  %v138_v63 = vadd.f32 1.0, %v130_v52  ;;  %v146_v0 = vmul.f32 %v1072_v45, %v1072_v45  ;;  %v147_v4 = vmul.f32 %v1074_v50, %v1074_v50 }
  0x2e   :  { %v1080_v1 = vpop.eup %1079  ;;  %v133_v2 = vmul.f32 518.0148, %v1078_v60  ;;  %v139_v3 = vadd.f32 1.0, %v131_v57  ;;  %v148_v5 = vmul.f32 %v1076_v55, %v1076_v55  ;;  %v149_v8 = vmul.f32 %v1078_v60, %v1078_v60 }
  0x2f   :  { %v134_v6 = vmul.f32 518.0148, %v1080_v1  ;;  %v140_v7 = vadd.f32 1.0, %v132_v62  ;;  %v150_v9 = vmul.f32 %v1080_v1, %v1080_v1  ;;  %v151_v14 = vadd.f32 %v143_v48, %v135_v53 }
  0x30   :  { %v141_v13 = vadd.f32 1.0, %v133_v2  ;;  %v152_v19 = vadd.f32 %v144_v49, %v136_v58  ;;  %v153_v20 = vadd.f32 %v145_v54, %v137_v59  ;;  %v1455_v22 = vmul.f32 518.01086, %v1076_v55 }
  0x31   :  { %v1082_v21 = vpop.eup %1081  ;;  %v1457_v23 = vmul.f32 518.01086, %v1078_v60  ;;  %v142_v24 = vadd.f32 1.0, %v134_v6  ;;  %v154_v27 = vadd.f32 %v146_v0, %v138_v63  ;;  %v1459_v37 = vmul.f32 518.01086, %v1080_v1 }
  0x32   :  { %v1084_v33 = vpop.eup %1083  ;;  %v155_v38 = vadd.f32 %v147_v4, %v139_v3  ;;  %1093 = vrcp.f32 %v151_v14  ;;  %v239_v41 = vmul.f32 518.0148, %v1082_v21  ;;  %v156_v45 = vadd.f32 %v148_v5, %v140_v7 }
  0x33   :  { %v1086_v43 = vpop.eup %1085  ;;  %v157_v47 = vadd.f32 %v149_v8, %v141_v13  ;;  %1095 = vrcp.f32 %v152_v19  ;;  %v240_v48 = vmul.f32 518.0148, %v1084_v33  ;;  %v158_v50 = vadd.f32 %v150_v9, %v142_v24 }
  0x34   :  { %v1461_v49 = vpop.eup %1087  ;;  %1097 = vrcp.f32 %v153_v20  ;;  %v1463_v52 = vmul.f32 518.01086, %v1082_v21  ;;  %v241_v53 = vmul.f32 518.0148, %v1086_v43  ;;  %v1467_v55 = vmul.f32 518.01086, %v1084_v33 }
  0x35   :  { %v1465_v54 = vpop.eup %1089  ;;  %1099 = vrcp.f32 %v154_v27  ;;  %v1469_v57 = vmul.f32 518.01086, %v1086_v43  ;;  %v242_v58 = vmul.f32 518.0148, %v1461_v49  ;;  %v247_v62 = vadd.f32 1.0, %v239_v41 }
  0x36   :  { %v1472_v59 = vpop.eup %1091  ;;  %1101 = vrcp.f32 %v155_v38  ;;  %v243_v60 = vmul.f32 518.0148, %v1465_v54  ;;  %v248_v63 = vadd.f32 1.0, %v240_v48  ;;  %v249_v1 = vadd.f32 1.0, %v241_v53 }
  0x37   :  { %1103 = vrcp.f32 %v156_v45  ;;  %v244_v0 = vmul.f32 518.0148, %v1472_v59  ;;  %v250_v2 = vadd.f32 1.0, %v242_v58  ;;  %v255_v4 = vmul.f32 %v1082_v21, %v1082_v21 }
  0x38   :  { %1105 = vrcp.f32 %v157_v47  ;;  %v251_v3 = vadd.f32 1.0, %v243_v60  ;;  %v256_v5 = vmul.f32 %v1084_v33, %v1084_v33  ;;  %v257_v7 = vmul.f32 %v1086_v43, %v1086_v43 }
  0x39   :  { %1107 = vrcp.f32 %v158_v50  ;;  %v252_v6 = vadd.f32 1.0, %v244_v0  ;;  %v258_v8 = vmul.f32 %v1461_v49, %v1461_v49  ;;  %v259_v9 = vmul.f32 %v1465_v54, %v1465_v54 }
  0x3a   :  { %1109 = vpow2.f32 %v1418_v28  ;;  %v260_v13 = vmul.f32 %v1472_v59, %v1472_v59  ;;  %v263_v14 = vadd.f32 %v255_v4, %v247_v62  ;;  %v264_v19 = vadd.f32 %v256_v5, %v248_v63 }
  0x3b   :  { %1111 = vpow2.f32 %v1423_v30  ;;  %v265_v20 = vadd.f32 %v257_v7, %v249_v1  ;;  %v266_v21 = vadd.f32 %v258_v8, %v250_v2  ;;  %v267_v24 = vadd.f32 %v259_v9, %v251_v3 }
  0x3c   :  { %v268_v27 = vadd.f32 %v260_v13, %v252_v6  ;;  %1113 = vrcp.f32 %v263_v14  ;;  %v313_v33 = vand.u32 2147483647, %v1426_v31  ;;  %v314_v28 = vand.u32 2147483647, %v1429_v32 }
  0x3d   :  { %1115 = vrcp.f32 %v264_v19  ;;  %v315_v38 = vand.u32 2147483647, %v1432_v34  ;;  %v316_v41 = vand.u32 2147483647, %v1435_v35  ;;  %v317_v43 = vand.u32 2147483647, %v1438_v36 }
  0x3e   :  { %1117 = vrcp.f32 %v265_v20  ;;  %v318_v30 = vand.u32 2147483647, %v1441_v39  ;;  %v319_v45 = vsub.f32 0.0, %v311_v40  ;;  %v320_v31 = vsub.f32 0.0, %v312_v44 }
  0x3f   :  { %v1094_v47 = vpop.eup %1093  ;;  %1119 = vrcp.f32 %v266_v21  ;;  %v321_v48 = vsub.f32 0.0, %v313_v33  ;;  %v322_v50 = vsub.f32 0.0, %v314_v28  ;;  %v323_v35 = vsub.f32 0.0, %v315_v38 }
  0x40   :  { %v1096_v32 = vpop.eup %1095  ;;  %v167_v34 = vmul.f32 %v1094_v47, %v1444_v42  ;;  %1121 = vrcp.f32 %v267_v24  ;;  %v324_v53 = vsub.f32 0.0, %v316_v41  ;;  %v325_v39 = vsub.f32 0.0, %v317_v43 }
  0x41   :  { %v1098_v58 = vpop.eup %1097  ;;  %v168_v36 = vmul.f32 %v1096_v32, %v1447_v46  ;;  %1123 = vrcp.f32 %v268_v27  ;;  %v326_v25 = vsub.f32 0.0, %v318_v30  ;;  %v327_v62 = vmul.f32 1.442695, %v319_v45 }
  0x42   :  { %v1100_v40 = vpop.eup %1099  ;;  %v169_v60 = vmul.f32 %v1098_v58, %v1449_v51  ;;  %v329_v29 = vmul.f32 1.442695, %v320_v31  ;;  %v331_v44 = vmul.f32 1.442695, %v321_v48  ;;  %v234_v42 = vmul.f32 518.01086, %v1461_v49 }
  0x43   :  { %v1102_v63 = vpop.eup %1101  ;;  %v170_v0 = vmul.f32 %v1100_v40, %v1451_v56  ;;  %v175_v1 = vadd.f32 %v168_v36, %v167_v34  ;;  %v333_v2 = vmul.f32 1.442695, %v322_v50  ;;  %v235_v4 = vmul.f32 518.01086, %v1465_v54 }
  0x44   :  { %v1104_v3 = vpop.eup %1103  ;;  %v1501_v46 = vmul.f32 518.01086, %v1472_v59  ;;  %1125 = vpow2.f32 %v327_v62  ;;  %v335_v5 = vmul.f32 1.442695, %v323_v35  ;;  %v171_v51 = vmul.f32 %v1102_v63, %v1453_v61 }
  0x45   :  { %v1106_v6 = vpop.eup %1105  ;;  %v176_v7 = vadd.f32 %v175_v1, %v169_v60  ;;  %1127 = vpow2.f32 %v329_v29  ;;  %v337_v8 = vmul.f32 1.442695, %v324_v53  ;;  %v172_v56 = vmul.f32 %v1104_v3, %v1455_v22 }
  0x46   :  { %v1108_v9 = vpop.eup %1107  ;;  %1129 = vpow2.f32 %v331_v44  ;;  %v339_v49 = vmul.f32 1.442695, %v325_v39  ;;  %v341_v13 = vmul.f32 1.442695, %v326_v25  ;;  %v173_v54 = vmul.f32 %v1106_v6, %v1457_v23 }
  0x47   :  { %v1110_v14 = vpop.eup %1109  ;;  %v177_v19 = vadd.f32 %v176_v7, %v170_v0  ;;  %1131 = vpow2.f32 %v333_v2  ;;  %v1507_v59 = vadd.f32 -43.75, %v1383_v10  ;;  %v1510_v24 = vadd.f32 -43.75, %v1385_v11 }
  0x48   :  { %v1112_v20 = vpop.eup %1111  ;;  %v245_v21 = vmul.f32 518.0148, %v1110_v14  ;;  %v261_v61 = vmul.f32 %v1110_v14, %v1110_v14  ;;  %1133 = vpow2.f32 %v335_v5  ;;  %v174_v22 = vmul.f32 %v1108_v9, %v1459_v37 }
  0x49   :  { %v1114_v27 = vpop.eup %1113  ;;  %v178_v33 = vadd.f32 %v177_v19, %v171_v51  ;;  %v246_v28 = vmul.f32 518.0148, %v1112_v20  ;;  %v262_v38 = vmul.f32 %v1112_v20, %v1112_v20  ;;  %1135 = vpow2.f32 %v337_v8 }
  0x4a   :  { %v1116_v41 = vpop.eup %1115  ;;  %v253_v23 = vadd.f32 1.0, %v245_v21  ;;  %v279_v43 = vmul.f32 %v1114_v27, %v1463_v52  ;;  %v1515_v30 = vadd.f32 -43.75, %v1387_v12  ;;  %1137 = vpow2.f32 %v339_v49 }
  0x4b   :  { %v1118_v45 = vpop.eup %1117  ;;  %v179_v47 = vadd.f32 %v178_v33, %v172_v56  ;;  %v254_v31 = vadd.f32 1.0, %v246_v28  ;;  %v280_v48 = vmul.f32 %v1116_v41, %v1467_v55  ;;  %v1518_v32 = vmul.f32 518.01086, %v1110_v14 }
  0x4c   :  { %v1120_v50 = vpop.eup %1119  ;;  %v269_v37 = vadd.f32 %v261_v61, %v253_v23  ;;  %v281_v34 = vmul.f32 %v1118_v45, %v1469_v57  ;;  %1139 = vpow2.f32 %v341_v13  ;;  %v1521_v25 = vmul.f32 518.01086, %v1112_v20 }
  0x4d   :  { %v1122_v35 = vpop.eup %1121  ;;  %v180_v53 = vadd.f32 %v179_v47, %v173_v54  ;;  %v270_v52 = vadd.f32 %v262_v38, %v254_v31  ;;  %v282_v58 = vmul.f32 %v1120_v50, %v234_v42  ;;  %v287_v36 = vadd.f32 %v280_v48, %v279_v43 }
  0x4e   :  { %v1124_v39 = vpop.eup %1123  ;;  %1141 = vrcp.f32 %v269_v37  ;;  %v1524_v40 = vadd.f32 -43.75, %v1389_v15  ;;  %v1527_v55 = vadd.f32 -43.75, %v1391_v16  ;;  %v283_v62 = vmul.f32 %v1122_v35, %v235_v4 }
  0x4f   :  { %v181_v60 = vadd.f32 %v180_v53, %v174_v22  ;;  %1143 = vrcp.f32 %v270_v52  ;;  %v288_v57 = vadd.f32 %v287_v36, %v281_v34  ;;  %v1530_v29 = vadd.f32 -43.75, %v1393_v17 }
  0x50   :  { %v1533_v44 = vadd.f32 -43.75, %v1395_v18  ;;  %v1536_v63 = vadd.f32 -43.75, %v1403_v26  ;;  %v423_v0 = vand.u32 2147483647, %v1507_v59  ;;  %v424_v3 = vand.u32 2147483647, %v1510_v24 }
  0x51   :  { %v1126_v1 = vpop.eup %1125  ;;  %v182_v42 = vrot.slane %v181_v60, 4  ;;  %v289_v2 = vadd.f32 %v288_v57, %v282_v58  ;;  %v1541_v5 = vadd.f32 -56.25, %v1383_v10  ;;  %v284_v6 = vmul.f32 %v1124_v39, %v1501_v46 }
  0x52   :  { %v1128_v4 = vpop.eup %1127  ;;  %v351_v51 = vmul.f32 518.0148, %v1126_v1  ;;  %v1546_v13 = vmul.f32 518.01086, %v1126_v1  ;;  %v427_v21 = vand.u32 2147483647, %v1527_v55  ;;  %v367_v33 = vmul.f32 %v1126_v1, %v1126_v1 }
  0x53   :  { %v1130_v9 = vpop.eup %1129  ;;  %v183_v56 = vadd.f32 %v182_v42, %v181_v60  ;;  %v290_v49 = vadd.f32 %v289_v2, %v283_v62  ;;  %v352_v14 = vmul.f32 518.0148, %v1128_v4  ;;  %v1548_v19 = vmul.f32 518.01086, %v1128_v4  ;;  %v188_v60 = vld [vmem:[#allocation5] sm:$0x1] }
  0x54   :  { %v1132_v54 = vpop.eup %1131  ;;  %v353_v20 = vmul.f32 518.0148, %v1130_v9  ;;  %v1551_v46 = vmul.f32 518.01086, %v1130_v9  ;;  %v359_v41 = vadd.f32 1.0, %v351_v51  ;;  %v368_v23 = vmul.f32 %v1128_v4, %v1128_v4 }
  0x55   :  { %v1134_v61 = vpop.eup %1133  ;;  %v184_v27 = vrot.slane %v183_v56, 2  ;;  %v354_v22 = vmul.f32 518.0148, %v1132_v54  ;;  %v291_v28 = vadd.f32 %v290_v49, %v284_v6  ;;  %v1553_v47 = vmul.f32 518.01086, %v1132_v54 }
  0x56   :  { %v355_v38 = vmul.f32 518.0148, %v1134_v61  ;;  %v1136_v43 = vpop.eup %1135  ;;  %v360_v31 = vadd.f32 1.0, %v352_v14  ;;  %v361_v48 = vadd.f32 1.0, %v353_v20  ;;  %v369_v35 = vmul.f32 %v1130_v9, %v1130_v9 }
  0x57   :  { %v185_v45 = vadd.f32 %v184_v27, %v183_v56  ;;  %v1555_v50 = vpop.eup %1137  ;;  %v356_v37 = vmul.f32 518.0148, %v1136_v43  ;;  %v362_v34 = vadd.f32 1.0, %v354_v22  ;;  %v370_v53 = vmul.f32 %v1132_v54, %v1132_v54 }
  0x58   :  { %v357_v36 = vmul.f32 518.0148, %v1555_v50  ;;  %v363_v39 = vadd.f32 1.0, %v355_v38  ;;  %v371_v55 = vmul.f32 %v1134_v61, %v1134_v61  ;;  %v372_v1 = vmul.f32 %v1136_v43, %v1136_v43 }
  0x59   :  { %v1557_v52 = vpop.eup %1139  ;;  %v186_v58 = vrot.slane %v185_v45, 1  ;;  %v364_v57 = vadd.f32 1.0, %v356_v37  ;;  %v373_v42 = vmul.f32 %v1555_v50, %v1555_v50  ;;  %v1563_v6 = vmul.f32 518.01086, %v1134_v61 }
  0x5a   :  { %v358_v62 = vmul.f32 518.0148, %v1557_v52  ;;  %v365_v51 = vadd.f32 1.0, %v357_v36  ;;  %v375_v9 = vadd.f32 %v367_v33, %v359_v41  ;;  %v374_v54 = vmul.f32 %v1557_v52, %v1557_v52 }
  0x5b   :  { %v1142_v2 = vpop.eup %1141  ;;  %v187_v4 = vadd.f32 %v186_v58, %v185_v45  ;;  %v376_v20 = vadd.f32 %v368_v23, %v360_v31  ;;  %v377_v38 = vadd.f32 %v369_v35, %v361_v48  ;;  %v378_v37 = vadd.f32 %v370_v53, %v362_v34 }
  0x5c   :  { %v1144_v56 = vpop.eup %1143  ;;  %v285_v49 = vmul.f32 %v1142_v2, %v1518_v32  ;;  %v366_v14 = vadd.f32 1.0, %v358_v62  ;;  %v379_v7 = vadd.f32 %v371_v55, %v363_v39  ;;  %v380_v45 = vadd.f32 %v372_v1, %v364_v57 }
  0x5d   :  { %v189_v27 = vadd.f32 %v188_v60, %v187_v4  ;;  %v286_v22 = vmul.f32 %v1144_v56, %v1521_v25  ;;  %v381_v61 = vadd.f32 %v373_v42, %v365_v51  ;;  %1145 = vrcp.f32 %v375_v9 }
  0x5e   :  { %v292_v8 = vadd.f32 %v291_v28, %v285_v49  ;;  %v428_v33 = vand.u32 2147483647, %v1530_v29  ;;  %v429_v32 = vand.u32 2147483647, %v1533_v44  ;;  %v430_v41 = vand.u32 2147483647, %v1536_v63 }
  0x5f   :  { %190 = vst [vmem:[#allocation5] sm:$0x1] %v189_v27  ;;  %1147 = vrcp.f32 %v376_v20  ;;  %v431_v23 = vsub.f32 0.0, %v423_v0  ;;  %v432_v25 = vsub.f32 0.0, %v424_v3  ;;  %v1819_v28 = vand.u32 2147483647, %v1515_v30 }
  0x60   :  { %v293_v58 = vadd.f32 %v292_v8, %v286_v22  ;;  %1149 = vrcp.f32 %v377_v38  ;;  %v1820_v48 = vand.u32 2147483647, %v1524_v40  ;;  %v435_v29 = vsub.f32 0.0, %v427_v21  ;;  %v300_v49 = vld [vmem:[#allocation5 + $0x1] sm:$0x1] }
  0x61   :  { %v433_v31 = vsub.f32 0.0, %v1819_v28  ;;  %v382_v44 = vadd.f32 %v374_v54, %v366_v14  ;;  %1151 = vrcp.f32 %v378_v37  ;;  %v436_v63 = vsub.f32 0.0, %v428_v33 }
  0x62   :  { %v434_v34 = vsub.f32 0.0, %v1820_v48  ;;  %v294_v35 = vrot.slane %v293_v58, 4  ;;  %v1580_v8 = vmul.f32 518.01086, %v1136_v43  ;;  %1153 = vrcp.f32 %v379_v7 }
  0x63   :  { %v437_v59 = vsub.f32 0.0, %v429_v32  ;;  %v439_v0 = vmul.f32 1.442695, %v431_v23  ;;  %1155 = vrcp.f32 %v380_v45  ;;  %v438_v24 = vsub.f32 0.0, %v430_v41 }
  0x64   :  { %v295_v53 = vadd.f32 %v294_v35, %v293_v58  ;;  %v441_v3 = vmul.f32 1.442695, %v432_v25  ;;  %1157 = vrcp.f32 %v381_v61  ;;  %v443_v30 = vmul.f32 1.442695, %v433_v31 }
  0x65   :  { %v445_v36 = vmul.f32 1.442695, %v434_v34  ;;  %v447_v39 = vmul.f32 1.442695, %v435_v29  ;;  %1159 = vrcp.f32 %v382_v44  ;;  %v449_v21 = vmul.f32 1.442695, %v436_v63 }
  0x66   :  { %v296_v40 = vrot.slane %v295_v53, 2  ;;  %v1029_v55 = vadd.f32 -56.25, %v1385_v11  ;;  %1161 = vpow2.f32 %v439_v0  ;;  %v1030_v43 = vadd.f32 -56.25, %v1387_v12 }
  0x67   :  { %v1031_v7 = vadd.f32 -56.25, %v1389_v15  ;;  %v1032_v60 = vadd.f32 -56.25, %v1391_v16  ;;  %1163 = vpow2.f32 %v441_v3  ;;  %v451_v57 = vmul.f32 1.442695, %v437_v59 }
  0x68   :  { %v297_v62 = vadd.f32 %v296_v40, %v295_v53  ;;  %v1033_v1 = vadd.f32 -56.25, %v1393_v17  ;;  %1165 = vpow2.f32 %v443_v30  ;;  %v453_v42 = vmul.f32 1.442695, %v438_v24 }
  0x69   :  { %v535_v2 = vand.u32 2147483647, %v1541_v5  ;;  %v536_v4 = vand.u32 2147483647, %v1029_v55  ;;  %1167 = vpow2.f32 %v445_v36  ;;  %v537_v9 = vand.u32 2147483647, %v1030_v43 }
  0x6a   :  { %v298_v51 = vrot.slane %v297_v62, 1  ;;  %v538_v56 = vand.u32 2147483647, %v1031_v7  ;;  %1169 = vpow2.f32 %v447_v39  ;;  %v1034_v14 = vadd.f32 -56.25, %v1395_v18  ;;  %v1146_v27 = vpop.eup %1145 }
  0x6b   :  { %v1035_v54 = vadd.f32 -56.25, %v1403_v26  ;;  %v539_v20 = vand.u32 2147483647, %v1032_v60  ;;  %1171 = vpow2.f32 %v449_v21  ;;  %v540_v38 = vand.u32 2147483647, %v1033_v1 }
  0x6c   :  { %v299_v22 = vadd.f32 %v298_v51, %v297_v62  ;;  %v543_v37 = vsub.f32 0.0, %v535_v2  ;;  %v1148_v45 = vpop.eup %1147  ;;  %v391_v5 = vmul.f32 %v1146_v27, %v1546_v13  ;;  %1173 = vpow2.f32 %v451_v57 }
  0x6d   :  { %v544_v61 = vsub.f32 0.0, %v536_v4  ;;  %v545_v33 = vsub.f32 0.0, %v537_v9  ;;  %v1150_v32 = vpop.eup %1149  ;;  %v392_v58 = vmul.f32 %v1148_v45, %v1548_v19  ;;  %1175 = vpow2.f32 %v453_v42 }
  0x6e   :  { %v301_v41 = vadd.f32 %v300_v49, %v299_v22  ;;  %v546_v23 = vsub.f32 0.0, %v538_v56  ;;  %v1152_v25 = vpop.eup %1151  ;;  %v349_v28 = vmul.f32 518.01086, %v1555_v50  ;;  %v393_v31 = vmul.f32 %v1150_v32, %v1551_v46 }
  0x6f   :  { %v541_v48 = vand.u32 2147483647, %v1034_v14  ;;  %v542_v34 = vand.u32 2147483647, %v1035_v54  ;;  %v1154_v29 = vpop.eup %1153  ;;  %v394_v13 = vmul.f32 %v1152_v25, %v1553_v47  ;;  %v399_v35 = vadd.f32 %v392_v58, %v391_v5 }
  0x70   :  { %302 = vst [vmem:[#allocation5 + $0x1] sm:$0x1] %v301_v41  ;;  %v547_v44 = vsub.f32 0.0, %v539_v20  ;;  %v551_v63 = vmul.f32 1.442695, %v543_v37  ;;  %v1156_v59 = vpop.eup %1155  ;;  %v395_v3 = vmul.f32 %v1154_v29, %v1563_v6  ;;  %v548_v50 = vsub.f32 0.0, %v540_v38 }
  0x71   :  { %v553_v0 = vmul.f32 1.442695, %v544_v61  ;;  %v555_v53 = vmul.f32 1.442695, %v545_v33  ;;  %v557_v19 = vmul.f32 1.442695, %v546_v23  ;;  %v1158_v24 = vpop.eup %1157  ;;  %v400_v30 = vadd.f32 %v399_v35, %v393_v31 }
  0x72   :  { %1177 = vpow2.f32 %v551_v63  ;;  %v1160_v46 = vpop.eup %1159  ;;  %v350_v36 = vmul.f32 518.01086, %v1557_v52  ;;  %v549_v39 = vsub.f32 0.0, %v541_v48  ;;  %v550_v40 = vsub.f32 0.0, %v542_v34 }
  0x73   :  { %1179 = vpow2.f32 %v553_v0  ;;  %v1162_v47 = vpop.eup %1161  ;;  %v396_v21 = vmul.f32 %v1156_v59, %v1580_v8  ;;  %v401_v55 = vadd.f32 %v400_v30, %v394_v13  ;;  %v1598_v60 = vmul.f32 1.442695, %v547_v44 }
  0x74   :  { %1181 = vpow2.f32 %v555_v53  ;;  %v1164_v43 = vpop.eup %1163  ;;  %v463_v7 = vmul.f32 518.0148, %v1162_v47  ;;  %v397_v62 = vmul.f32 %v1158_v24, %v349_v28  ;;  %v1600_v42 = vmul.f32 1.442695, %v548_v50 }
  0x75   :  { %1183 = vpow2.f32 %v557_v19  ;;  %v1166_v6 = vpop.eup %1165  ;;  %v402_v57 = vadd.f32 %v401_v55, %v395_v3  ;;  %v464_v1 = vmul.f32 518.0148, %v1164_v43  ;;  %v398_v2 = vmul.f32 %v1160_v46, %v350_v36 }
  0x76   :  { %v1168_v52 = vpop.eup %1167  ;;  %v465_v4 = vmul.f32 518.0148, %v1166_v6  ;;  %v1602_v51 = vmul.f32 1.442695, %v549_v39  ;;  %v1604_v9 = vmul.f32 1.442695, %v550_v40  ;;  %v479_v54 = vmul.f32 %v1162_v47, %v1162_v47 }
  0x77   :  { %v1170_v8 = vpop.eup %1169  ;;  %v403_v56 = vadd.f32 %v402_v57, %v396_v21  ;;  %v1606_v49 = vmul.f32 518.01086, %v1162_v47  ;;  %v466_v14 = vmul.f32 518.0148, %v1168_v52  ;;  %v1608_v27 = vmul.f32 518.01086, %v1164_v43 }
  0x78   :  { %v1172_v20 = vpop.eup %1171  ;;  %v467_v22 = vmul.f32 518.0148, %v1170_v8  ;;  %v471_v38 = vadd.f32 1.0, %v463_v7  ;;  %v480_v37 = vmul.f32 %v1164_v43, %v1164_v43  ;;  %v472_v33 = vadd.f32 1.0, %v464_v1 }
  0x79   :  { %v1174_v45 = vpop.eup %1173  ;;  %v404_v5 = vadd.f32 %v403_v56, %v397_v62  ;;  %v468_v61 = vmul.f32 518.0148, %v1172_v20  ;;  %v481_v32 = vmul.f32 %v1166_v6, %v1166_v6  ;;  %v473_v23 = vadd.f32 1.0, %v465_v4 }
  0x7a   :  { %v1610_v41 = vpop.eup %1175  ;;  %v469_v58 = vmul.f32 518.0148, %v1174_v45  ;;  %v474_v25 = vadd.f32 1.0, %v466_v14  ;;  %v482_v28 = vmul.f32 %v1168_v52, %v1168_v52  ;;  %v475_v34 = vadd.f32 1.0, %v467_v22 }
  0x7b   :  { %v405_v31 = vadd.f32 %v404_v5, %v398_v2  ;;  %v470_v48 = vmul.f32 518.0148, %v1610_v41  ;;  %v483_v29 = vmul.f32 %v1170_v8, %v1170_v8  ;;  %v1613_v13 = vmul.f32 518.01086, %v1166_v6 }
  0x7c   :  { %v476_v35 = vadd.f32 1.0, %v468_v61  ;;  %v477_v44 = vadd.f32 1.0, %v469_v58  ;;  %v484_v63 = vmul.f32 %v1172_v20, %v1172_v20  ;;  %v485_v0 = vmul.f32 %v1174_v45, %v1174_v45 }
  0x7d   :  { %v406_v59 = vrot.slane %v405_v31, 4  ;;  %v487_v53 = vadd.f32 %v479_v54, %v471_v38  ;;  %v488_v19 = vadd.f32 %v480_v37, %v472_v33  ;;  %v478_v3 = vadd.f32 1.0, %v470_v48  ;;  %v412_v33 = vld [vmem:[#allocation5 + $0x2] sm:$0x1] }
  0x7e   :  { %v486_v30 = vmul.f32 %v1610_v41, %v1610_v41  ;;  %v489_v50 = vadd.f32 %v481_v32, %v473_v23  ;;  %v490_v46 = vadd.f32 %v482_v28, %v474_v25  ;;  %v1617_v40 = vmul.f32 518.01086, %v1168_v52 }
  0x7f   :  { %v1178_v24 = vpop.eup %1177  ;;  %v407_v39 = vadd.f32 %v406_v59, %v405_v31  ;;  %v491_v47 = vadd.f32 %v483_v29, %v475_v34  ;;  %1185 = vrcp.f32 %v487_v53  ;;  %v1619_v55 = vmul.f32 518.01086, %v1170_v8 }
  0x80   :  { %v1180_v36 = vpop.eup %1179  ;;  %v492_v43 = vadd.f32 %v484_v63, %v476_v35  ;;  %1187 = vrcp.f32 %v488_v19  ;;  %v575_v7 = vmul.f32 518.0148, %v1178_v24  ;;  %v493_v57 = vadd.f32 %v485_v0, %v477_v44 }
  0x81   :  { %v1182_v21 = vpop.eup %1181  ;;  %v408_v62 = vrot.slane %v407_v39, 2  ;;  %1189 = vrcp.f32 %v489_v50  ;;  %v576_v1 = vmul.f32 518.0148, %v1180_v36  ;;  %v494_v2 = vadd.f32 %v486_v30, %v478_v3 }
  0x82   :  { %v1621_v6 = vpop.eup %1183  ;;  %1191 = vrcp.f32 %v490_v46  ;;  %v577_v4 = vmul.f32 518.0148, %v1182_v21  ;;  %v1624_v14 = vmul.f32 518.01086, %v1172_v20  ;;  %v583_v8 = vadd.f32 1.0, %v575_v7 }
  0x83   :  { %v578_v52 = vmul.f32 518.0148, %v1621_v6  ;;  %v409_v56 = vadd.f32 %v408_v62, %v407_v39  ;;  %1193 = vrcp.f32 %v491_v47  ;;  %v1626_v54 = vmul.f32 518.01086, %v1174_v45 }
  0x84   :  { %1195 = vrcp.f32 %v492_v43  ;;  %v584_v22 = vadd.f32 1.0, %v576_v1  ;;  %v591_v38 = vmul.f32 %v1178_v24, %v1178_v24  ;;  %v585_v5 = vadd.f32 1.0, %v577_v4 }
  0x85   :  { %v410_v37 = vrot.slane %v409_v56, 1  ;;  %1197 = vrcp.f32 %v493_v57  ;;  %v592_v61 = vmul.f32 %v1180_v36, %v1180_v36  ;;  %v586_v32 = vadd.f32 1.0, %v578_v52 }
  0x86   :  { %1199 = vrcp.f32 %v494_v2  ;;  %v593_v58 = vmul.f32 %v1182_v21, %v1182_v21  ;;  %v594_v23 = vmul.f32 %v1621_v6, %v1621_v6  ;;  %v599_v25 = vadd.f32 %v591_v38, %v583_v8 }
  0x87   :  { %v411_v20 = vadd.f32 %v410_v37, %v409_v56  ;;  %1201 = vpow2.f32 %v1598_v60  ;;  %v1036_v45 = vadd.f32 -68.75, %v1383_v10  ;;  %v600_v28 = vadd.f32 %v592_v61, %v584_v22 }
  0x88   :  { %1203 = vpow2.f32 %v1600_v42  ;;  %v1037_v31 = vadd.f32 -68.75, %v1385_v11  ;;  %v1038_v48 = vadd.f32 -68.75, %v1387_v12  ;;  %v1636_v29 = vmul.f32 518.01086, %v1610_v41 }
  0x89   :  { %v413_v34 = vadd.f32 %v412_v33, %v411_v20  ;;  %1205 = vpow2.f32 %v1602_v51  ;;  %v1639_v35 = vmul.f32 518.01086, %v1178_v24  ;;  %v601_v60 = vadd.f32 %v593_v58, %v585_v5 }
  0x8a   :  { %1207 = vpow2.f32 %v1604_v9  ;;  %v1039_v44 = vadd.f32 -68.75, %v1389_v15  ;;  %v1040_v42 = vadd.f32 -68.75, %v1391_v16  ;;  %v647_v63 = vand.u32 2147483647, %v1036_v45 }
  0x8b   :  { %414 = vst [vmem:[#allocation5 + $0x2] sm:$0x1] %v413_v34  ;;  %1209 = vrcp.f32 %v599_v25  ;;  %v648_v59 = vand.u32 2147483647, %v1037_v31  ;;  %v649_v0 = vand.u32 2147483647, %v1038_v48  ;;  %v602_v41 = vadd.f32 %v594_v23, %v586_v32 }
  0x8c   :  { %v1186_v53 = vpop.eup %1185  ;;  %v1644_v19 = vmul.f32 518.01086, %v1180_v36  ;;  %1211 = vrcp.f32 %v600_v28  ;;  %v1041_v51 = vadd.f32 -68.75, %v1393_v17  ;;  %v1648_v3 = vmul.f32 518.01086, %v1182_v21 }
  0x8d   :  { %v1188_v24 = vpop.eup %1187  ;;  %v503_v9 = vmul.f32 %v1186_v53, %v1606_v49  ;;  %v1042_v30 = vadd.f32 -68.75, %v1395_v18  ;;  %v1043_v50 = vadd.f32 -68.75, %v1403_v26  ;;  %v650_v47 = vand.u32 2147483647, %v1039_v44 }
  0x8e   :  { %v1190_v46 = vpop.eup %1189  ;;  %v504_v39 = vmul.f32 %v1188_v24, %v1608_v27  ;;  %v655_v43 = vsub.f32 0.0, %v647_v63  ;;  %v656_v36 = vsub.f32 0.0, %v648_v59  ;;  %1213 = vrcp.f32 %v601_v60 }
  0x8f   :  { %v1192_v7 = vpop.eup %1191  ;;  %v505_v62 = vmul.f32 %v1190_v46, %v1613_v13  ;;  %v651_v57 = vand.u32 2147483647, %v1040_v42  ;;  %v657_v1 = vsub.f32 0.0, %v649_v0  ;;  %1215 = vrcp.f32 %v602_v41 }
  0x90   :  { %v1194_v2 = vpop.eup %1193  ;;  %v506_v49 = vmul.f32 %v1192_v7, %v1617_v40  ;;  %v511_v21 = vadd.f32 %v504_v39, %v503_v9  ;;  %v652_v4 = vand.u32 2147483647, %v1041_v51  ;;  %v653_v56 = vand.u32 2147483647, %v1042_v30 }
  0x91   :  { %v1196_v52 = vpop.eup %1195  ;;  %v663_v8 = vmul.f32 1.442695, %v655_v43  ;;  %v665_v22 = vmul.f32 1.442695, %v656_v36  ;;  %v507_v38 = vmul.f32 %v1194_v2, %v1619_v55  ;;  %v1657_v5 = vmul.f32 518.01086, %v1621_v6 }
  0x92   :  { %v1198_v27 = vpop.eup %1197  ;;  %v512_v37 = vadd.f32 %v511_v21, %v505_v62  ;;  %v667_v13 = vmul.f32 1.442695, %v657_v1  ;;  %v654_v33 = vand.u32 2147483647, %v1043_v50  ;;  %v658_v32 = vsub.f32 0.0, %v650_v47 }
  0x93   :  { %v1200_v61 = vpop.eup %1199  ;;  %v659_v58 = vsub.f32 0.0, %v651_v57  ;;  %1217 = vpow2.f32 %v663_v8  ;;  %v508_v23 = vmul.f32 %v1196_v52, %v1624_v14  ;;  %v660_v25 = vsub.f32 0.0, %v652_v4 }
  0x94   :  { %v1202_v40 = vpop.eup %1201  ;;  %v513_v20 = vadd.f32 %v512_v37, %v506_v49  ;;  %1219 = vpow2.f32 %v665_v22  ;;  %v661_v55 = vsub.f32 0.0, %v653_v56  ;;  %v509_v6 = vmul.f32 %v1198_v27, %v1626_v54 }
  0x95   :  { %v1204_v45 = vpop.eup %1203  ;;  %v579_v28 = vmul.f32 518.0148, %v1202_v40  ;;  %v595_v31 = vmul.f32 %v1202_v40, %v1202_v40  ;;  %1221 = vpow2.f32 %v667_v13  ;;  %v662_v53 = vsub.f32 0.0, %v654_v33 }
  0x96   :  { %v1206_v48 = vpop.eup %1205  ;;  %v514_v34 = vadd.f32 %v513_v20, %v507_v38  ;;  %v580_v60 = vmul.f32 518.0148, %v1204_v45  ;;  %v596_v44 = vmul.f32 %v1204_v45, %v1204_v45  ;;  %v510_v41 = vmul.f32 %v1200_v61, %v1636_v29 }
  0x97   :  { %v1208_v42 = vpop.eup %1207  ;;  %v581_v63 = vmul.f32 518.0148, %v1206_v48  ;;  %v587_v59 = vadd.f32 1.0, %v579_v28  ;;  %v597_v0 = vmul.f32 %v1206_v48, %v1206_v48  ;;  %v669_v47 = vmul.f32 1.442695, %v658_v32 }
  0x98   :  { %v1210_v14 = vpop.eup %1209  ;;  %v515_v51 = vadd.f32 %v514_v34, %v508_v23  ;;  %v582_v24 = vmul.f32 518.0148, %v1208_v42  ;;  %v588_v9 = vadd.f32 1.0, %v580_v60  ;;  %v598_v46 = vmul.f32 %v1208_v42, %v1208_v42 }
  0x99   :  { %v1212_v30 = vpop.eup %1211  ;;  %v589_v50 = vadd.f32 1.0, %v581_v63  ;;  %v603_v39 = vadd.f32 %v595_v31, %v587_v59  ;;  %v671_v7 = vmul.f32 1.442695, %v659_v58  ;;  %v615_v57 = vmul.f32 %v1210_v14, %v1639_v35 }
  0x9a   :  { %v516_v54 = vadd.f32 %v515_v51, %v509_v6  ;;  %v590_v43 = vadd.f32 1.0, %v582_v24  ;;  %v604_v36 = vadd.f32 %v596_v44, %v588_v9  ;;  %v616_v1 = vmul.f32 %v1212_v30, %v1644_v19  ;;  %v524_v51 = vld [vmem:[#allocation5 + $0x3] sm:$0x1] }
  0x9b   :  { %v605_v62 = vadd.f32 %v597_v0, %v589_v50  ;;  %1223 = vrcp.f32 %v603_v39  ;;  %v1214_v2 = vpop.eup %1213  ;;  %v673_v21 = vmul.f32 1.442695, %v660_v25  ;;  %v571_v52 = vmul.f32 518.01086, %v1202_v40 }
  0x9c   :  { %v517_v29 = vadd.f32 %v516_v54, %v510_v41  ;;  %v606_v49 = vadd.f32 %v598_v46, %v590_v43  ;;  %1225 = vrcp.f32 %v604_v36  ;;  %v1216_v4 = vpop.eup %1215  ;;  %v572_v56 = vmul.f32 518.01086, %v1204_v45 }
  0x9d   :  { %1227 = vrcp.f32 %v605_v62  ;;  %v675_v8 = vmul.f32 1.442695, %v661_v55  ;;  %v573_v27 = vmul.f32 518.01086, %v1206_v48  ;;  %v1664_v38 = vmul.f32 518.01086, %v1208_v42 }
  0x9e   :  { %v518_v22 = vrot.slane %v517_v29, 4  ;;  %1229 = vrcp.f32 %v606_v49  ;;  %v617_v37 = vmul.f32 %v1214_v2, %v1648_v3  ;;  %v623_v35 = vadd.f32 %v616_v1, %v615_v57 }
  0x9f   :  { %1231 = vpow2.f32 %v669_v47  ;;  %v677_v19 = vmul.f32 1.442695, %v662_v53  ;;  %v618_v33 = vmul.f32 %v1216_v4, %v1657_v5  ;;  %v1044_v32 = vadd.f32 -81.25, %v1383_v10 }
  0xa0   :  { %v1218_v13 = vpop.eup %1217  ;;  %v519_v61 = vadd.f32 %v518_v22, %v517_v29  ;;  %1233 = vpow2.f32 %v671_v7  ;;  %v1045_v23 = vadd.f32 -81.25, %v1385_v11  ;;  %v1046_v20 = vadd.f32 -81.25, %v1387_v12 }
  0xa1   :  { %v1220_v58 = vpop.eup %1219  ;;  %1235 = vpow2.f32 %v673_v21  ;;  %v687_v40 = vmul.f32 518.0148, %v1218_v13  ;;  %v1672_v28 = vadd.f32 -81.25, %v1389_v15  ;;  %v624_v31 = vadd.f32 %v623_v35, %v617_v37 }
  0xa2   :  { %v1222_v25 = vpop.eup %1221  ;;  %v520_v45 = vrot.slane %v519_v61, 2  ;;  %1237 = vpow2.f32 %v675_v8  ;;  %v688_v3 = vmul.f32 518.0148, %v1220_v58  ;;  %v703_v34 = vmul.f32 %v1218_v13, %v1218_v13 }
  0xa3   :  { %1239 = vpow2.f32 %v677_v19  ;;  %v689_v5 = vmul.f32 518.0148, %v1222_v25  ;;  %v695_v55 = vadd.f32 1.0, %v687_v40  ;;  %v704_v60 = vmul.f32 %v1220_v58, %v1220_v58 }
  0xa4   :  { %v521_v48 = vadd.f32 %v520_v45, %v519_v61  ;;  %v696_v6 = vadd.f32 1.0, %v688_v3  ;;  %v705_v42 = vmul.f32 %v1222_v25, %v1222_v25  ;;  %v1048_v63 = vadd.f32 -81.25, %v1391_v16 }
  0xa5   :  { %v697_v44 = vadd.f32 1.0, %v689_v5  ;;  %v1676_v59 = vadd.f32 -81.25, %v1393_v17  ;;  %v711_v53 = vadd.f32 %v703_v34, %v695_v55  ;;  %v1679_v41 = vadd.f32 -81.25, %v1395_v18 }
  0xa6   :  { %v522_v0 = vrot.slane %v521_v48, 1  ;;  %v712_v14 = vadd.f32 %v704_v60, %v696_v6  ;;  %v625_v24 = vadd.f32 %v624_v31, %v618_v33  ;;  %v1681_v9 = vmul.f32 518.01086, %v1218_v13 }
  0xa7   :  { %v713_v30 = vadd.f32 %v705_v42, %v697_v44  ;;  %v1684_v50 = vadd.f32 -81.25, %v1403_v26  ;;  %v1686_v47 = vmul.f32 518.01086, %v1220_v58  ;;  %v1688_v54 = vmul.f32 518.01086, %v1222_v25 }
  0xa8   :  { %v1224_v46 = vpop.eup %1223  ;;  %v523_v39 = vadd.f32 %v522_v0, %v521_v48  ;;  %1241 = vrcp.f32 %v711_v53  ;;  %v759_v7 = vand.u32 2147483647, %v1044_v32  ;;  %v760_v62 = vand.u32 2147483647, %v1045_v23 }
  0xa9   :  { %v1226_v43 = vpop.eup %1225  ;;  %v619_v36 = vmul.f32 %v1224_v46, %v571_v52  ;;  %1243 = vrcp.f32 %v712_v14  ;;  %v761_v29 = vand.u32 2147483647, %v1046_v20  ;;  %v762_v49 = vand.u32 2147483647, %v1672_v28 }
  0xaa   :  { %v1228_v57 = vpop.eup %1227  ;;  %v525_v1 = vadd.f32 %v524_v51, %v523_v39  ;;  %v620_v2 = vmul.f32 %v1226_v43, %v572_v56  ;;  %1245 = vrcp.f32 %v713_v30  ;;  %v763_v22 = vand.u32 2147483647, %v1048_v63 }
  0xab   :  { %v1230_v21 = vpop.eup %1229  ;;  %v621_v4 = vmul.f32 %v1228_v57, %v573_v27  ;;  %v626_v8 = vadd.f32 %v625_v24, %v619_v36  ;;  %v764_v35 = vand.u32 2147483647, %v1676_v59  ;;  %v765_v52 = vand.u32 2147483647, %v1679_v41 }
  0xac   :  { %v1691_v37 = vpop.eup %1231  ;;  %526 = vst [vmem:[#allocation5 + $0x3] sm:$0x1] %v525_v1  ;;  %v766_v19 = vand.u32 2147483647, %v1684_v50  ;;  %v622_v56 = vmul.f32 %v1230_v21, %v1664_v38  ;;  %v767_v27 = vsub.f32 0.0, %v759_v7  ;;  %v768_v23 = vsub.f32 0.0, %v760_v62 }
  0xad   :  { %v1696_v13 = vpop.eup %1233  ;;  %v627_v61 = vadd.f32 %v626_v8, %v620_v2  ;;  %v690_v33 = vmul.f32 518.0148, %v1691_v37  ;;  %v706_v40 = vmul.f32 %v1691_v37, %v1691_v37  ;;  %v769_v20 = vsub.f32 0.0, %v761_v29 }
  0xae   :  { %v1700_v32 = vpop.eup %1235  ;;  %v691_v58 = vmul.f32 518.0148, %v1696_v13  ;;  %v707_v38 = vmul.f32 %v1696_v13, %v1696_v13  ;;  %v770_v6 = vsub.f32 0.0, %v762_v49  ;;  %v771_v42 = vsub.f32 0.0, %v763_v22 }
  0xaf   :  { %v1705_v25 = vpop.eup %1237  ;;  %v628_v45 = vadd.f32 %v627_v61, %v621_v4  ;;  %v692_v3 = vmul.f32 518.0148, %v1700_v32  ;;  %v698_v28 = vadd.f32 1.0, %v690_v33  ;;  %v708_v48 = vmul.f32 %v1700_v32, %v1700_v32 }
  0xb0   :  { %v1710_v31 = vpop.eup %1239  ;;  %v693_v5 = vmul.f32 518.0148, %v1705_v25  ;;  %v699_v55 = vadd.f32 1.0, %v691_v58  ;;  %v709_v59 = vmul.f32 %v1705_v25, %v1705_v25  ;;  %v772_v50 = vsub.f32 0.0, %v764_v35 }
  0xb1   :  { %v629_v34 = vadd.f32 %v628_v45, %v622_v56  ;;  %v694_v60 = vmul.f32 518.0148, %v1710_v31  ;;  %v700_v44 = vadd.f32 1.0, %v692_v3  ;;  %v710_v0 = vmul.f32 %v1710_v31, %v1710_v31 }
  0xb2   :  { %v701_v63 = vadd.f32 1.0, %v693_v5  ;;  %v714_v53 = vadd.f32 %v706_v40, %v698_v28  ;;  %v715_v51 = vadd.f32 %v707_v38, %v699_v55  ;;  %v773_v46 = vsub.f32 0.0, %v765_v52  ;;  %v636_v40 = vld [vmem:[#allocation5 + $0x4] sm:$0x1] }
  0xb3   :  { %v630_v14 = vrot.slane %v629_v34, 4  ;;  %v702_v41 = vadd.f32 1.0, %v694_v60  ;;  %v716_v24 = vadd.f32 %v708_v48, %v700_v44  ;;  %v775_v7 = vmul.f32 1.442695, %v767_v27 }
  0xb4   :  { %v717_v30 = vadd.f32 %v709_v59, %v701_v63  ;;  %1247 = vrcp.f32 %v714_v53  ;;  %v774_v57 = vsub.f32 0.0, %v766_v19  ;;  %v777_v1 = vmul.f32 1.442695, %v768_v23 }
  0xb5   :  { %v1242_v39 = vpop.eup %1241  ;;  %v631_v43 = vadd.f32 %v630_v14, %v629_v34  ;;  %v718_v36 = vadd.f32 %v710_v0, %v702_v41  ;;  %1249 = vrcp.f32 %v715_v51  ;;  %v779_v2 = vmul.f32 1.442695, %v769_v20 }
  0xb6   :  { %v1244_v62 = vpop.eup %1243  ;;  %1251 = vrcp.f32 %v716_v24  ;;  %v727_v49 = vmul.f32 %v1242_v39, %v1681_v9  ;;  %v781_v8 = vmul.f32 1.442695, %v770_v6  ;;  %v783_v22 = vmul.f32 1.442695, %v771_v42 }
  0xb7   :  { %v632_v29 = vrot.slane %v631_v43, 2  ;;  %1253 = vrcp.f32 %v717_v30  ;;  %v728_v21 = vmul.f32 %v1244_v62, %v1686_v47  ;;  %v1246_v4 = vpop.eup %1245  ;;  %v1052_v35 = vadd.f32 -93.75, %v1383_v10 }
  0xb8   :  { %1255 = vrcp.f32 %v718_v36  ;;  %v785_v56 = vmul.f32 1.442695, %v772_v50  ;;  %v1053_v61 = vadd.f32 -93.75, %v1385_v11  ;;  %v787_v19 = vmul.f32 1.442695, %v773_v46 }
  0xb9   :  { %v633_v52 = vadd.f32 %v632_v29, %v631_v43  ;;  %1257 = vpow2.f32 %v775_v7  ;;  %v1054_v33 = vadd.f32 -93.75, %v1387_v12  ;;  %v1055_v27 = vadd.f32 -93.75, %v1389_v15 }
  0xba   :  { %1259 = vpow2.f32 %v777_v1  ;;  %v729_v47 = vmul.f32 %v1246_v4, %v1688_v54  ;;  %v735_v58 = vadd.f32 %v728_v21, %v727_v49  ;;  %v789_v23 = vmul.f32 1.442695, %v774_v57 }
  0xbb   :  { %v634_v9 = vrot.slane %v633_v52, 1  ;;  %1261 = vpow2.f32 %v779_v2  ;;  %v871_v10 = vand.u32 2147483647, %v1052_v35  ;;  %v872_v45 = vand.u32 2147483647, %v1053_v61 }
  0xbc   :  { %1263 = vpow2.f32 %v781_v8  ;;  %v873_v3 = vand.u32 2147483647, %v1054_v33  ;;  %v682_v11 = vmul.f32 518.01086, %v1691_v37  ;;  %v683_v28 = vmul.f32 518.01086, %v1696_v13 }
  0xbd   :  { %v635_v20 = vadd.f32 %v634_v9, %v633_v52  ;;  %1265 = vpow2.f32 %v783_v22  ;;  %v874_v12 = vand.u32 2147483647, %v1055_v27  ;;  %v684_v38 = vmul.f32 518.01086, %v1700_v32 }
  0xbe   :  { %1267 = vpow2.f32 %v785_v56  ;;  %v736_v54 = vadd.f32 %v735_v58, %v729_v47  ;;  %v879_v5 = vsub.f32 0.0, %v871_v10  ;;  %v880_v55 = vsub.f32 0.0, %v872_v45 }
  0xbf   :  { %v637_v15 = vadd.f32 %v636_v40, %v635_v20  ;;  %1269 = vpow2.f32 %v787_v19  ;;  %v881_v48 = vsub.f32 0.0, %v873_v3  ;;  %v882_v34 = vsub.f32 0.0, %v874_v12 }
  0xc0   :  { %1271 = vpow2.f32 %v789_v23  ;;  %v685_v44 = vmul.f32 518.01086, %v1705_v25  ;;  %v887_v42 = vmul.f32 1.442695, %v879_v5  ;;  %v889_v13 = vmul.f32 1.442695, %v880_v55 }
  0xc1   :  { %v1248_v6 = vpop.eup %1247  ;;  %638 = vst [vmem:[#allocation5 + $0x4] sm:$0x1] %v637_v15  ;;  %v686_v59 = vmul.f32 518.01086, %v1710_v31  ;;  %v891_v32 = vmul.f32 1.442695, %v881_v48 }
  0xc2   :  { %v1250_v60 = vpop.eup %1249  ;;  %v730_v37 = vmul.f32 %v1248_v6, %v682_v11  ;;  %v1056_v51 = vadd.f32 -93.75, %v1391_v16  ;;  %1273 = vpow2.f32 %v887_v42  ;;  %v1057_v30 = vadd.f32 -93.75, %v1393_v17 }
  0xc3   :  { %v1252_v63 = vpop.eup %1251  ;;  %v731_v0 = vmul.f32 %v1250_v60, %v683_v28  ;;  %v1735_v50 = vadd.f32 -93.75, %v1395_v18  ;;  %1275 = vpow2.f32 %v889_v13  ;;  %v893_v25 = vmul.f32 1.442695, %v882_v34 }
  0xc4   :  { %v1254_v53 = vpop.eup %1253  ;;  %v732_v14 = vmul.f32 %v1252_v63, %v684_v38  ;;  %v737_v41 = vadd.f32 %v736_v54, %v730_v37  ;;  %v1740_v43 = vadd.f32 -93.75, %v1403_v26  ;;  %1277 = vpow2.f32 %v891_v32 }
  0xc5   :  { %v1256_v24 = vpop.eup %1255  ;;  %v733_v39 = vmul.f32 %v1254_v53, %v685_v44  ;;  %v875_v2 = vand.u32 2147483647, %v1056_v51  ;;  %v876_v29 = vand.u32 2147483647, %v1057_v30  ;;  %1279 = vpow2.f32 %v893_v25 }
  0xc6   :  { %v1737_v46 = vpop.eup %1257  ;;  %v738_v31 = vadd.f32 %v737_v41, %v731_v0  ;;  %v734_v17 = vmul.f32 %v1256_v24, %v686_v59  ;;  %v877_v4 = vand.u32 2147483647, %v1735_v50  ;;  %v878_v8 = vand.u32 2147483647, %v1740_v43 }
  0xc7   :  { %v1742_v36 = vpop.eup %1259  ;;  %v799_v16 = vmul.f32 518.0148, %v1737_v46  ;;  %v815_v56 = vmul.f32 %v1737_v46, %v1737_v46  ;;  %v883_v54 = vsub.f32 0.0, %v875_v2  ;;  %v884_v0 = vsub.f32 0.0, %v876_v29 }
  0xc8   :  { %v1745_v7 = vpop.eup %1261  ;;  %v739_v62 = vadd.f32 %v738_v31, %v732_v14  ;;  %v800_v18 = vmul.f32 518.0148, %v1742_v36  ;;  %v816_v61 = vmul.f32 %v1742_v36, %v1742_v36  ;;  %v885_v14 = vsub.f32 0.0, %v877_v4 }
  0xc9   :  { %v1748_v57 = vpop.eup %1263  ;;  %v801_v1 = vmul.f32 518.0148, %v1745_v7  ;;  %v807_v52 = vadd.f32 1.0, %v799_v16  ;;  %v817_v47 = vmul.f32 %v1745_v7, %v1745_v7  ;;  %v886_v25 = vsub.f32 0.0, %v878_v8 }
  0xca   :  { %v1751_v26 = vpop.eup %1265  ;;  %v740_v49 = vadd.f32 %v739_v62, %v733_v39  ;;  %v802_v21 = vmul.f32 518.0148, %v1748_v57  ;;  %v808_v9 = vadd.f32 1.0, %v800_v18  ;;  %v818_v20 = vmul.f32 %v1748_v57, %v1748_v57  ;;  %v748_v62 = vld [vmem:[#allocation5 + $0x5] sm:$0x1] }
  0xcb   :  { %v1756_v22 = vpop.eup %1267  ;;  %v803_v35 = vmul.f32 518.0148, %v1751_v26  ;;  %v809_v23 = vadd.f32 1.0, %v801_v1  ;;  %v819_v28 = vmul.f32 %v1751_v26, %v1751_v26  ;;  %v823_v48 = vadd.f32 %v815_v56, %v807_v52 }
  0xcc   :  { %v1763_v19 = vpop.eup %1269  ;;  %v741_v33 = vadd.f32 %v740_v49, %v734_v17  ;;  %v804_v27 = vmul.f32 518.0148, %v1756_v22  ;;  %v810_v10 = vadd.f32 1.0, %v802_v21  ;;  %v820_v38 = vmul.f32 %v1756_v22, %v1756_v22 }
  0xcd   :  { %v1768_v58 = vpop.eup %1271  ;;  %v805_v40 = vmul.f32 518.0148, %v1763_v19  ;;  %v811_v11 = vadd.f32 1.0, %v803_v35  ;;  %v821_v55 = vmul.f32 %v1763_v19, %v1763_v19  ;;  %v824_v6 = vadd.f32 %v816_v61, %v808_v9 }
  0xce   :  { %v742_v45 = vrot.slane %v741_v33, 4  ;;  %v806_v3 = vmul.f32 518.0148, %v1768_v58  ;;  %v812_v12 = vadd.f32 1.0, %v804_v27  ;;  %v822_v44 = vmul.f32 %v1768_v58, %v1768_v58 }
  0xcf   :  { %v813_v15 = vadd.f32 1.0, %v805_v40  ;;  %v1780_v34 = vpop.eup %1273  ;;  %v825_v37 = vadd.f32 %v817_v47, %v809_v23  ;;  %v826_v42 = vadd.f32 %v818_v20, %v810_v10  ;;  %v827_v59 = vadd.f32 %v819_v28, %v811_v11 }
  0xd0   :  { %v743_v5 = vadd.f32 %v742_v45, %v741_v33  ;;  %v814_v60 = vadd.f32 1.0, %v806_v3  ;;  %v1784_v13 = vpop.eup %1275  ;;  %1281 = vrcp.f32 %v823_v48  ;;  %v828_v53 = vadd.f32 %v820_v38, %v812_v12 }
  0xd1   :  { %v1786_v32 = vpop.eup %1277  ;;  %1283 = vrcp.f32 %v824_v6  ;;  %v911_v41 = vmul.f32 518.0148, %v1780_v34  ;;  %v829_v24 = vadd.f32 %v821_v55, %v813_v15  ;;  %v912_v30 = vmul.f32 518.0148, %v1784_v13 }
  0xd2   :  { %v744_v63 = vrot.slane %v743_v5, 2  ;;  %1285 = vrcp.f32 %v825_v37  ;;  %v830_v50 = vadd.f32 %v822_v44, %v814_v60  ;;  %v913_v39 = vmul.f32 518.0148, %v1786_v32  ;;  %v1791_v31 = vpop.eup %1279 }
  0xd3   :  { %1287 = vrcp.f32 %v826_v42  ;;  %v895_v16 = vmul.f32 1.442695, %v883_v54  ;;  %v919_v17 = vadd.f32 1.0, %v911_v41  ;;  %v897_v18 = vmul.f32 1.442695, %v884_v0 }
  0xd4   :  { %v745_v51 = vadd.f32 %v744_v63, %v743_v5  ;;  %1289 = vrcp.f32 %v827_v59  ;;  %v920_v1 = vadd.f32 1.0, %v912_v30  ;;  %v927_v2 = vmul.f32 %v1780_v34, %v1780_v34 }
  0xd5   :  { %1291 = vrcp.f32 %v828_v53  ;;  %v899_v49 = vmul.f32 1.442695, %v885_v14  ;;  %v928_v21 = vmul.f32 %v1784_v13, %v1784_v13  ;;  %v901_v4 = vmul.f32 1.442695, %v886_v25 }
  0xd6   :  { %v746_v43 = vrot.slane %v745_v51, 1  ;;  %1293 = vrcp.f32 %v829_v24  ;;  %v914_v8 = vmul.f32 518.0148, %v1791_v31  ;;  %v921_v35 = vadd.f32 1.0, %v913_v39 }
  0xd7   :  { %1295 = vrcp.f32 %v830_v50  ;;  %v929_v56 = vmul.f32 %v1786_v32, %v1786_v32  ;;  %v935_v61 = vadd.f32 %v927_v2, %v919_v17  ;;  %v936_v33 = vadd.f32 %v928_v21, %v920_v1 }
  0xd8   :  { %v747_v29 = vadd.f32 %v746_v43, %v745_v51  ;;  %1297 = vpow2.f32 %v895_v16  ;;  %v791_v27 = vmul.f32 518.01086, %v1737_v46  ;;  %v792_v9 = vmul.f32 518.01086, %v1742_v36 }
  0xd9   :  { %1299 = vpow2.f32 %v897_v18  ;;  %v793_v47 = vmul.f32 518.01086, %v1745_v7  ;;  %v922_v40 = vadd.f32 1.0, %v914_v8  ;;  %v930_v23 = vmul.f32 %v1791_v31, %v1791_v31 }
  0xda   :  { %v749_v52 = vadd.f32 %v748_v62, %v747_v29  ;;  %1301 = vpow2.f32 %v899_v49  ;;  %v937_v10 = vadd.f32 %v929_v56, %v921_v35  ;;  %v794_v45 = vmul.f32 518.01086, %v1748_v57 }
  0xdb   :  { %1303 = vpow2.f32 %v901_v4  ;;  %v795_v46 = vmul.f32 518.01086, %v1751_v26  ;;  %v938_v7 = vadd.f32 %v930_v23, %v922_v40  ;;  %v796_v54 = vmul.f32 518.01086, %v1756_v22 }
  0xdc   :  { %750 = vst [vmem:[#allocation5 + $0x5] sm:$0x1] %v749_v52  ;;  %1305 = vrcp.f32 %v935_v61  ;;  %v797_v57 = vmul.f32 518.01086, %v1763_v19  ;;  %v798_v26 = vmul.f32 518.01086, %v1768_v58 }
  0xdd   :  { %v1282_v20 = vpop.eup %1281  ;;  %1307 = vrcp.f32 %v936_v33  ;;  %v903_v53 = vmul.f32 518.01086, %v1780_v34  ;;  %v904_v25 = vmul.f32 518.01086, %v1784_v13  ;;  %v905_v4 = vmul.f32 518.01086, %v1786_v32 }
  0xde   :  { %v1284_v3 = vpop.eup %1283  ;;  %v839_v11 = vmul.f32 %v1282_v20, %v791_v27  ;;  %1309 = vrcp.f32 %v937_v10 }
  0xdf   :  { %v1286_v28 = vpop.eup %1285  ;;  %v840_v12 = vmul.f32 %v1284_v3, %v792_v9  ;;  %1311 = vrcp.f32 %v938_v7 }
  0xe0   :  { %v1288_v36 = vpop.eup %1287  ;;  %v841_v15 = vmul.f32 %v1286_v28, %v793_v47  ;;  %v906_v47 = vmul.f32 518.01086, %v1791_v31 }
  0xe1   :  { %v1290_v38 = vpop.eup %1289  ;;  %v842_v5 = vmul.f32 %v1288_v36, %v794_v45  ;;  %v847_v55 = vadd.f32 %v840_v12, %v839_v11  ;;  %v860_v36 = vld [vmem:[#allocation5 + $0x6] sm:$0x1] }
  0xe2   :  { %v1292_v48 = vpop.eup %1291  ;;  %v843_v60 = vmul.f32 %v1290_v38, %v795_v46 }
  0xe3   :  { %v1294_v6 = vpop.eup %1293  ;;  %v848_v44 = vadd.f32 %v847_v55, %v841_v15  ;;  %v844_v63 = vmul.f32 %v1292_v48, %v796_v54 }
  0xe4   :  { %v1296_v37 = vpop.eup %1295  ;;  %v845_v51 = vmul.f32 %v1294_v6, %v797_v57 }
  0xe5   :  { %v1298_v42 = vpop.eup %1297  ;;  %v849_v59 = vadd.f32 %v848_v44, %v842_v5  ;;  %v846_v58 = vmul.f32 %v1296_v37, %v798_v26 }
  0xe6   :  { %v1300_v0 = vpop.eup %1299  ;;  %v915_v14 = vmul.f32 518.0148, %v1298_v42  ;;  %v931_v22 = vmul.f32 %v1298_v42, %v1298_v42  ;;  %v907_v28 = vmul.f32 518.01086, %v1298_v42 }
  0xe7   :  { %v1302_v41 = vpop.eup %1301  ;;  %v850_v24 = vadd.f32 %v849_v59, %v843_v60  ;;  %v916_v30 = vmul.f32 518.0148, %v1300_v0  ;;  %v932_v50 = vmul.f32 %v1300_v0, %v1300_v0  ;;  %v908_v12 = vmul.f32 518.01086, %v1300_v0 }
  0xe8   :  { %v1304_v19 = vpop.eup %1303  ;;  %v917_v39 = vmul.f32 518.0148, %v1302_v41  ;;  %v923_v43 = vadd.f32 1.0, %v915_v14  ;;  %v933_v16 = vmul.f32 %v1302_v41, %v1302_v41  ;;  %v909_v15 = vmul.f32 518.01086, %v1302_v41 }
  0xe9   :  { %v1306_v17 = vpop.eup %1305  ;;  %v851_v62 = vadd.f32 %v850_v24, %v844_v63  ;;  %v918_v18 = vmul.f32 518.0148, %v1304_v19  ;;  %v924_v1 = vadd.f32 1.0, %v916_v30  ;;  %v934_v29 = vmul.f32 %v1304_v19, %v1304_v19 }
  0xea   :  { %v1308_v2 = vpop.eup %1307  ;;  %v925_v34 = vadd.f32 1.0, %v917_v39  ;;  %v939_v49 = vadd.f32 %v931_v22, %v923_v43  ;;  %v951_v13 = vmul.f32 %v1306_v17, %v903_v53  ;;  %v910_v55 = vmul.f32 518.01086, %v1304_v19 }
  0xeb   :  { %v852_v21 = vadd.f32 %v851_v62, %v845_v51  ;;  %v926_v8 = vadd.f32 1.0, %v918_v18  ;;  %v940_v35 = vadd.f32 %v932_v50, %v924_v1  ;;  %v952_v56 = vmul.f32 %v1308_v2, %v904_v25  ;;  %v1310_v61 = vpop.eup %1309  ;;  %v972_v51 = vld [vmem:[#allocation5 + $0x7] sm:$0x1] }
  0xec   :  { %v941_v52 = vadd.f32 %v933_v16, %v925_v34  ;;  %1313 = vrcp.f32 %v939_v49  ;;  %v953_v40 = vmul.f32 %v1310_v61, %v905_v4  ;;  %v1312_v10 = vpop.eup %1311 }
  0xed   :  { %v853_v33 = vadd.f32 %v852_v21, %v846_v58  ;;  %v942_v27 = vadd.f32 %v934_v29, %v926_v8  ;;  %1315 = vrcp.f32 %v940_v35  ;;  %v959_v23 = vadd.f32 %v952_v56, %v951_v13 }
  0xee   :  { %1317 = vrcp.f32 %v941_v52  ;;  %v954_v45 = vmul.f32 %v1312_v10, %v906_v47 }
  0xef   :  { %v854_v9 = vrot.slane %v853_v33, 4  ;;  %1319 = vrcp.f32 %v942_v27  ;;  %v960_v3 = vadd.f32 %v959_v23, %v953_v40 }
  0xf1   :  { %v855_v20 = vadd.f32 %v854_v9, %v853_v33  ;;  %v961_v7 = vadd.f32 %v960_v3, %v954_v45 }
  0xf3   :  { %v856_v32 = vrot.slane %v855_v20, 2 }
  0xf5   :  { %v857_v11 = vadd.f32 %v856_v32, %v855_v20 }
  0xf7   :  { %v858_v46 = vrot.slane %v857_v11, 1 }
  0xf9   :  { %v1314_v38 = vpop.eup %1313  ;;  %v859_v54 = vadd.f32 %v858_v46, %v857_v11 }
  0xfa   :  { %v1316_v5 = vpop.eup %1315  ;;  %v955_v48 = vmul.f32 %v1314_v38, %v907_v28 }
  0xfb   :  { %v1318_v31 = vpop.eup %1317  ;;  %v861_v6 = vadd.f32 %v860_v36, %v859_v54  ;;  %v956_v57 = vmul.f32 %v1316_v5, %v908_v12 }
  0xfc   :  { %v1320_v60 = vpop.eup %1319  ;;  %v957_v44 = vmul.f32 %v1318_v31, %v909_v15  ;;  %v962_v37 = vadd.f32 %v961_v7, %v955_v48 }
  0xfd   :  { %862 = vst [vmem:[#allocation5 + $0x6] sm:$0x1] %v861_v6  ;;  %v958_v26 = vmul.f32 %v1320_v60, %v910_v55 }
  0xfe   :  { %v963_v63 = vadd.f32 %v962_v37, %v956_v57 }
 0x100   :  { %v964_v42 = vadd.f32 %v963_v63, %v957_v44 }
 0x102   :  { %v965_v59 = vadd.f32 %v964_v42, %v958_v26 }
 0x104   :  { %v966_v0 = vrot.slane %v965_v59, 4 }
 0x106   :  { %v967_v53 = vadd.f32 %v966_v0, %v965_v59 }
 0x108   :  { %v968_v14 = vrot.slane %v967_v53, 2 }
 0x10a   :  { %v969_v22 = vadd.f32 %v968_v14, %v967_v53 }
 0x10c   :  { %v970_v41 = vrot.slane %v969_v22, 1 }
 0x10e   :  { %v971_v24 = vadd.f32 %v970_v41, %v969_v22 }
 0x110   :  { %v973_v30 = vadd.f32 %v972_v51, %v971_v24 }
 0x112   :  { %974 = vst [vmem:[#allocation5 + $0x7] sm:$0x1] %v973_v30 }
 0x119   :  { %v978_v50 = vld [vmem:[#allocation5] sm:$0xff] }
 0x11a   :  { %v979_v19 = vmul.f32 0.016666668, %v978_v50 }
 0x11c   :  { %980 = vst [vmem:[#allocation5] sm:$0xff] %v979_v19 }
 0x11d   :  { %1352 = shalt.err (!%p1349_p9)
}
 0x11e   :  { %990 = dma.vmem_to_hbm [thread:$0]  %s988_s13, 128, %s1818_s1, [#allocation4]  }
 0x11f   :  { %1363 = dma.done.wait [#allocation4], 128  }
 0x120   :  { %1364 = vsyncadd [#allocation4], 4294967168 }
 0x121   :  { %994 = vsyncpa [#allocation3], 1 }
 0x122   :  { %995 = vsyncpa [#allocation4], 1 }

</bundles_post_ra>
